<compile_context>
chip_gen: v7x
topology: tpu7x:2x2x1
jax: 0.10.0
libtpu: 0.0.40
codegen_flags: <defaults>
</compile_context>

<pallas_src>
import functools

import jax
import jax.numpy as jnp
from jax import lax
from jax.experimental import pallas as pl
from jax.experimental.pallas import tpu as pltpu


def _round_up(x: int, m: int) -> int:
    return (x + m - 1) // m * m


def _pick_block_tokens(t_pad: int, cap: int = 128) -> int:
    """Largest multiple-of-8 divisor of t_pad, capped at `cap`."""
    best = 8
    tq = 8
    while tq <= min(t_pad, cap):
        if t_pad % tq == 0:
            best = tq
        tq += 8
    return best


def _pick_block_batch(b: int, tq: int, max_rows: int = 512) -> int:
    """Largest batch block in {8,4,2,1} dividing B with BB*TQ <= max_rows."""
    for bb in (8, 4, 2, 1):
        if b % bb == 0 and bb * tq <= max_rows:
            return bb
    return 1


def _embed_kernel(tok_sref, tok_hbm, pos_ref, o_ref, gbuf, sem,
                  *, TQ, BB, acc_dtype):
    # tok_sref : SMEM (B, T_pad) int32 token ids (scalar prefetch)
    # tok_hbm  : HBM  (V, D) token embedding table (memory_space=pl.ANY)
    # pos_ref  : VMEM (TQ, D) position-embedding tile for this token block
    # o_ref    : VMEM (BB, TQ, D) output tile
    # gbuf     : VMEM (2*BB*TQ, D) gather scratch, double-buffered by slot
    # sem      : DMA semaphores, shape (2,) -- one per slot (aggregated)
    ROWS = BB * TQ
    b = pl.program_id(0)            # batch-block index
    t = pl.program_id(1)            # token-block index
    nt = pl.num_programs(1)
    slot = lax.rem(t, 2)

    def issue_gathers(t_blk, slot_):
        # BB*TQ independent row gathers; all signal sem[slot_].
        base_t = t_blk * TQ
        for bb in range(BB):
            b_row = b * BB + bb
            for j in range(TQ):
                # NOTE: out-of-range token ids become OOB HBM DMAs (the default
                # DMA bounds check faults rather than corrupts); no clamping to
                # keep the scalar/descriptor-issue path lean.
                tok_id = tok_sref[b_row, base_t + j]
                dst = slot_ * ROWS + bb * TQ + j
                pltpu.make_async_copy(
                    tok_hbm.at[pl.ds(tok_id, 1), :],
                    gbuf.at[pl.ds(dst, 1), :],
                    sem.at[slot_],
                ).start()

    # Prime the pipeline at the first token block of each batch block.  This
    # is done per batch block (not only once globally) so the kernel stays
    # correct when the batch-block axis is sharded across TensorCores.
    @pl.when(t == 0)
    def _prime():
        issue_gathers(0, 0)

    # Prefetch the next token block of this batch block into the other slot.
    @pl.when(t + 1 < nt)
    def _prefetch_next():
        issue_gathers(t + 1, 1 - slot)

    # Aggregated wait: one descriptor whose byte count equals the sum of the
    # ROWS row gathers that signaled sem[slot].  (Only .wait() is called, so
    # the src/dst refs only provide the byte count.)
    wait_start = pl.multiple_of(slot * ROWS, 8)
    wait_view = gbuf.at[pl.ds(wait_start, ROWS), :]
    pltpu.make_async_copy(wait_view, wait_view, sem.at[slot]).wait()

    # Compute: tok_rows + pos, lane-dense (TQ, D) tiles per batch row.
    pos = pos_ref[...].astype(acc_dtype)
    for bb in range(BB):
        row_start = pl.multiple_of(slot * ROWS + bb * TQ, 8)
        tok_rows = gbuf[pl.ds(row_start, TQ), :].astype(acc_dtype)
        o_ref[bb, :, :] = (tok_rows + pos).astype(o_ref.dtype)


def clip_embedding(tokens, token_table, pos_table, *,
                   block_tokens=None, block_batch=None):
    """tokens: (B, T) int; token_table: (V, D); pos_table: (T, D) -> (B, T, D)."""
    B, T = tokens.shape
    V, D = token_table.shape
    assert pos_table.shape == (T, D)

    tokens = tokens.astype(jnp.int32)

    # Pad the sequence to a multiple of 8 (real CLIP has T=77) so the token
    # grid keeps >= 8-row tiles and the double buffer stays active.
    T_pad = _round_up(T, 8)
    if T_pad != T:
        tokens = jnp.pad(tokens, ((0, 0), (0, T_pad - T)))          # id 0: valid row
        pos_table = jnp.pad(pos_table, ((0, T_pad - T), (0, 0)))

    TQ = block_tokens if block_tokens is not None else _pick_block_tokens(T_pad)
    assert T_pad % TQ == 0, "block_tokens must divide the (padded) sequence length"
    assert TQ % 8 == 0, "block_tokens must be a multiple of 8"
    BB = block_batch if block_batch is not None else _pick_block_batch(B, TQ)
    assert B % BB == 0, "block_batch must divide the batch size"
    ROWS = BB * TQ

    # bf16 tables -> add directly in bf16 (v6e/v7x VPU); otherwise add in f32.
    if token_table.dtype == jnp.bfloat16 and pos_table.dtype == jnp.bfloat16:
        acc_dtype = jnp.bfloat16
    else:
        acc_dtype = jnp.float32

    kernel = functools.partial(_embed_kernel, TQ=TQ, BB=BB, acc_dtype=acc_dtype)

    grid_spec = pltpu.PrefetchScalarGridSpec(
        num_scalar_prefetch=1,
        grid=(B // BB, T_pad // TQ),
        in_specs=[
            # Token table stays in HBM; rows are gathered manually via DMA.
            pl.BlockSpec(memory_space=pl.ANY),
            # Position table tiled per token block (scales to large T*D).
            pl.BlockSpec((TQ, D), lambda b, t, tok: (t, 0)),
        ],
        # Dense (BB, TQ, D) output tiles -> unmasked stores, big writebacks.
        out_specs=pl.BlockSpec((BB, TQ, D), lambda b, t, tok: (b, t, 0)),
        scratch_shapes=[
            pltpu.VMEM((2 * ROWS, D), token_table.dtype),   # double-buffered gather
            pltpu.SemaphoreType.DMA((2,)),                  # one aggregate sem / slot
        ],
    )

    out = pl.pallas_call(
        kernel,
        grid_spec=grid_spec,
        out_shape=jax.ShapeDtypeStruct((B, T_pad, D), token_table.dtype),
        compiler_params=pltpu.CompilerParams(
            # Batch-block axis shards across TensorCores (v7x megacore); the
            # token axis must stay sequential for the cross-step double buffer.
            dimension_semantics=("parallel", "arbitrary"),
        ),
    )(tokens, token_table, pos_table)

    return out[:, :T, :]


if __name__ == "__main__":
    # Small shapes consistent with the module's forward.  T=13 exercises the
    # pad-to-multiple-of-8 path; block_tokens=8 forces 2 token blocks so the
    # double-buffered prefetch and aggregated waits are actually exercised.
    n_vocab, n_embd, n_tokens = 64, 128, 13
    batch = 2

    key = jax.random.PRNGKey(0)
    k_tok, k_emb, k_pos = jax.random.split(key, 3)

    tokens = jax.random.randint(k_tok, (batch, n_tokens), 0, n_vocab, dtype=jnp.int32)
    token_table = jax.random.normal(k_emb, (n_vocab, n_embd), dtype=jnp.float32)
    # position_embedding parameter (PyTorch init'd as zeros; random here so the
    # add is actually exercised).
    pos_table = jax.random.normal(k_pos, (n_tokens, n_embd), dtype=jnp.float32) * 0.02

    out = clip_embedding(tokens, token_table, pos_table, block_tokens=8)
    out = jax.block_until_ready(out)

    # Reference in plain JAX.
    ref = jnp.take(token_table, tokens, axis=0) + pos_table[None, :, :]
    assert out.shape == (batch, n_tokens, n_embd)
    assert jnp.allclose(out, ref, atol=1e-6), "mismatch vs reference"

    print("KERNEL_OK")
</pallas_src>

<mosaic_0001>
module attributes {stable_mosaic.version = 11 : i64} {
  func.func @_embed_kernel(%arg0: i32, %arg1: i32, %arg2: memref<2x16xi32, #tpu.memory_space<smem>>, %arg3: memref<64x128xf32, #tpu.memory_space<any>>, %arg4: memref<8x128xf32, #tpu.memory_space<vmem>>, %arg5: memref<2x8x128xf32, #tpu.memory_space<vmem>>, %arg6: memref<32x128xf32, #tpu.memory_space<vmem>>, %arg7: memref<2x!tpu.dma_semaphore, #tpu.memory_space<semaphore_mem>>) attributes {dimension_semantics = [#tpu.dimension_semantics<parallel>, #tpu.dimension_semantics<arbitrary>], iteration_bounds = array<i64: 1, 2>, scalar_prefetch = 1 : i64, scratch_operands = 2 : i64, tpu.core_type = #tpu.core_type<tc>, window_params = [{}, {transform_indices = @transform_1, window_bounds = array<i64: 8, 128>}, {transform_indices = @transform_2, window_bounds = array<i64: 2, 8, 128>}]} {
    %c2_i32 = arith.constant 2 : i32
    %0 = arith.remsi %arg1, %c2_i32 : i32
    %c0_i32 = arith.constant 0 : i32
    %1 = arith.cmpi eq, %arg1, %c0_i32 : i32
    %2 = arith.extui %1 : i1 to i32
    %c0_i32_0 = arith.constant 0 : i32
    %3 = arith.cmpi ne, %2, %c0_i32_0 : i32
    scf.if %3 {
      %c2_i32_16 = arith.constant 2 : i32
      %33 = arith.muli %arg0, %c2_i32_16 : i32
      %c0_i32_17 = arith.constant 0 : i32
      %34 = arith.addi %33, %c0_i32_17 : i32
      %35 = arith.index_cast %34 : i32 to index
      %c0_18 = arith.constant 0 : index
      %36 = memref.load %arg2[%35, %c0_18] : memref<2x16xi32, #tpu.memory_space<smem>>
      %c0_i32_19 = arith.constant 0 : i32
      %c0_i32_20 = arith.constant 0 : i32
      %37 = tpu.memref_slice %arg3[%36, %c0_i32_20] : memref<64x128xf32, #tpu.memory_space<any>> -> memref<1x128xf32, #tpu.memory_space<any>>
      %c0_i32_21 = arith.constant 0 : i32
      %c0_i32_22 = arith.constant 0 : i32
      %38 = tpu.memref_slice %arg6[%c0_i32_21, %c0_i32_22] : memref<32x128xf32, #tpu.memory_space<vmem>> -> memref<1x128xf32, #tpu.memory_space<vmem>>
      %39 = tpu.memref_slice %arg7[%c0_i32_19] : memref<2x!tpu.dma_semaphore, #tpu.memory_space<semaphore_mem>> -> memref<1x!tpu.dma_semaphore, #tpu.memory_space<semaphore_mem>>
      %40 = tpu.memref_squeeze %39 : memref<1x!tpu.dma_semaphore, #tpu.memory_space<semaphore_mem>> -> memref<!tpu.dma_semaphore, #tpu.memory_space<semaphore_mem>>
      tpu.enqueue_dma source(%37 : memref<1x128xf32, #tpu.memory_space<any>>) target(%38 : memref<1x128xf32, #tpu.memory_space<vmem>>) target_semaphore(%40 : memref<!tpu.dma_semaphore, #tpu.memory_space<semaphore_mem>>)
      %41 = arith.index_cast %34 : i32 to index
      %c1_23 = arith.constant 1 : index
      %42 = memref.load %arg2[%41, %c1_23] : memref<2x16xi32, #tpu.memory_space<smem>>
      %c0_i32_24 = arith.constant 0 : i32
      %c0_i32_25 = arith.constant 0 : i32
      %43 = tpu.memref_slice %arg3[%42, %c0_i32_25] : memref<64x128xf32, #tpu.memory_space<any>> -> memref<1x128xf32, #tpu.memory_space<any>>
      %c1_i32_26 = arith.constant 1 : i32
      %c0_i32_27 = arith.constant 0 : i32
      %44 = tpu.memref_slice %arg6[%c1_i32_26, %c0_i32_27] : memref<32x128xf32, #tpu.memory_space<vmem>> -> memref<1x128xf32, #tpu.memory_space<vmem>>
      %45 = tpu.memref_slice %arg7[%c0_i32_24] : memref<2x!tpu.dma_semaphore, #tpu.memory_space<semaphore_mem>> -> memref<1x!tpu.dma_semaphore, #tpu.memory_space<semaphore_mem>>
      %46 = tpu.memref_squeeze %45 : memref<1x!tpu.dma_semaphore, #tpu.memory_space<semaphore_mem>> -> memref<!tpu.dma_semaphore, #tpu.memory_space<semaphore_mem>>
      tpu.enqueue_dma source(%43 : memref<1x128xf32, #tpu.memory_space<any>>) target(%44 : memref<1x128xf32, #tpu.memory_space<vmem>>) target_semaphore(%46 : memref<!tpu.dma_semaphore, #tpu.memory_space<semaphore_mem>>)
      %47 = arith.index_cast %34 : i32 to index
      %c2 = arith.constant 2 : index
      %48 = memref.load %arg2[%47, %c2] : memref<2x16xi32, #tpu.memory_space<smem>>
      %c0_i32_28 = arith.constant 0 : i32
      %c0_i32_29 = arith.constant 0 : i32
      %49 = tpu.memref_slice %arg3[%48, %c0_i32_29] : memref<64x128xf32, #tpu.memory_space<any>> -> memref<1x128xf32, #tpu.memory_space<any>>
      %c2_i32_30 = arith.constant 2 : i32
      %c0_i32_31 = arith.constant 0 : i32
      %50 = tpu.memref_slice %arg6[%c2_i32_30, %c0_i32_31] : memref<32x128xf32, #tpu.memory_space<vmem>> -> memref<1x128xf32, #tpu.memory_space<vmem>>
      %51 = tpu.memref_slice %arg7[%c0_i32_28] : memref<2x!tpu.dma_semaphore, #tpu.memory_space<semaphore_mem>> -> memref<1x!tpu.dma_semaphore, #tpu.memory_space<semaphore_mem>>
      %52 = tpu.memref_squeeze %51 : memref<1x!tpu.dma_semaphore, #tpu.memory_space<semaphore_mem>> -> memref<!tpu.dma_semaphore, #tpu.memory_space<semaphore_mem>>
      tpu.enqueue_dma source(%49 : memref<1x128xf32, #tpu.memory_space<any>>) target(%50 : memref<1x128xf32, #tpu.memory_space<vmem>>) target_semaphore(%52 : memref<!tpu.dma_semaphore, #tpu.memory_space<semaphore_mem>>)
      %53 = arith.index_cast %34 : i32 to index
      %c3 = arith.constant 3 : index
      %54 = memref.load %arg2[%53, %c3] : memref<2x16xi32, #tpu.memory_space<smem>>
      %c0_i32_32 = arith.constant 0 : i32
      %c0_i32_33 = arith.constant 0 : i32
      %55 = tpu.memref_slice %arg3[%54, %c0_i32_33] : memref<64x128xf32, #tpu.memory_space<any>> -> memref<1x128xf32, #tpu.memory_space<any>>
      %c3_i32 = arith.constant 3 : i32
      %c0_i32_34 = arith.constant 0 : i32
      %56 = tpu.memref_slice %arg6[%c3_i32, %c0_i32_34] : memref<32x128xf32, #tpu.memory_space<vmem>> -> memref<1x128xf32, #tpu.memory_space<vmem>>
      %57 = tpu.memref_slice %arg7[%c0_i32_32] : memref<2x!tpu.dma_semaphore, #tpu.memory_space<semaphore_mem>> -> memref<1x!tpu.dma_semaphore, #tpu.memory_space<semaphore_mem>>
      %58 = tpu.memref_squeeze %57 : memref<1x!tpu.dma_semaphore, #tpu.memory_space<semaphore_mem>> -> memref<!tpu.dma_semaphore, #tpu.memory_space<semaphore_mem>>
      tpu.enqueue_dma source(%55 : memref<1x128xf32, #tpu.memory_space<any>>) target(%56 : memref<1x128xf32, #tpu.memory_space<vmem>>) target_semaphore(%58 : memref<!tpu.dma_semaphore, #tpu.memory_space<semaphore_mem>>)
      %59 = arith.index_cast %34 : i32 to index
      %c4 = arith.constant 4 : index
      %60 = memref.load %arg2[%59, %c4] : memref<2x16xi32, #tpu.memory_space<smem>>
      %c0_i32_35 = arith.constant 0 : i32
      %c0_i32_36 = arith.constant 0 : i32
      %61 = tpu.memref_slice %arg3[%60, %c0_i32_36] : memref<64x128xf32, #tpu.memory_space<any>> -> memref<1x128xf32, #tpu.memory_space<any>>
      %c4_i32 = arith.constant 4 : i32
      %c0_i32_37 = arith.constant 0 : i32
      %62 = tpu.memref_slice %arg6[%c4_i32, %c0_i32_37] : memref<32x128xf32, #tpu.memory_space<vmem>> -> memref<1x128xf32, #tpu.memory_space<vmem>>
      %63 = tpu.memref_slice %arg7[%c0_i32_35] : memref<2x!tpu.dma_semaphore, #tpu.memory_space<semaphore_mem>> -> memref<1x!tpu.dma_semaphore, #tpu.memory_space<semaphore_mem>>
      %64 = tpu.memref_squeeze %63 : memref<1x!tpu.dma_semaphore, #tpu.memory_space<semaphore_mem>> -> memref<!tpu.dma_semaphore, #tpu.memory_space<semaphore_mem>>
      tpu.enqueue_dma source(%61 : memref<1x128xf32, #tpu.memory_space<any>>) target(%62 : memref<1x128xf32, #tpu.memory_space<vmem>>) target_semaphore(%64 : memref<!tpu.dma_semaphore, #tpu.memory_space<semaphore_mem>>)
      %65 = arith.index_cast %34 : i32 to index
      %c5 = arith.constant 5 : index
      %66 = memref.load %arg2[%65, %c5] : memref<2x16xi32, #tpu.memory_space<smem>>
      %c0_i32_38 = arith.constant 0 : i32
      %c0_i32_39 = arith.constant 0 : i32
      %67 = tpu.memref_slice %arg3[%66, %c0_i32_39] : memref<64x128xf32, #tpu.memory_space<any>> -> memref<1x128xf32, #tpu.memory_space<any>>
      %c5_i32 = arith.constant 5 : i32
      %c0_i32_40 = arith.constant 0 : i32
      %68 = tpu.memref_slice %arg6[%c5_i32, %c0_i32_40] : memref<32x128xf32, #tpu.memory_space<vmem>> -> memref<1x128xf32, #tpu.memory_space<vmem>>
      %69 = tpu.memref_slice %arg7[%c0_i32_38] : memref<2x!tpu.dma_semaphore, #tpu.memory_space<semaphore_mem>> -> memref<1x!tpu.dma_semaphore, #tpu.memory_space<semaphore_mem>>
      %70 = tpu.memref_squeeze %69 : memref<1x!tpu.dma_semaphore, #tpu.memory_space<semaphore_mem>> -> memref<!tpu.dma_semaphore, #tpu.memory_space<semaphore_mem>>
      tpu.enqueue_dma source(%67 : memref<1x128xf32, #tpu.memory_space<any>>) target(%68 : memref<1x128xf32, #tpu.memory_space<vmem>>) target_semaphore(%70 : memref<!tpu.dma_semaphore, #tpu.memory_space<semaphore_mem>>)
      %71 = arith.index_cast %34 : i32 to index
      %c6 = arith.constant 6 : index
      %72 = memref.load %arg2[%71, %c6] : memref<2x16xi32, #tpu.memory_space<smem>>
      %c0_i32_41 = arith.constant 0 : i32
      %c0_i32_42 = arith.constant 0 : i32
      %73 = tpu.memref_slice %arg3[%72, %c0_i32_42] : memref<64x128xf32, #tpu.memory_space<any>> -> memref<1x128xf32, #tpu.memory_space<any>>
      %c6_i32 = arith.constant 6 : i32
      %c0_i32_43 = arith.constant 0 : i32
      %74 = tpu.memref_slice %arg6[%c6_i32, %c0_i32_43] : memref<32x128xf32, #tpu.memory_space<vmem>> -> memref<1x128xf32, #tpu.memory_space<vmem>>
      %75 = tpu.memref_slice %arg7[%c0_i32_41] : memref<2x!tpu.dma_semaphore, #tpu.memory_space<semaphore_mem>> -> memref<1x!tpu.dma_semaphore, #tpu.memory_space<semaphore_mem>>
      %76 = tpu.memref_squeeze %75 : memref<1x!tpu.dma_semaphore, #tpu.memory_space<semaphore_mem>> -> memref<!tpu.dma_semaphore, #tpu.memory_space<semaphore_mem>>
      tpu.enqueue_dma source(%73 : memref<1x128xf32, #tpu.memory_space<any>>) target(%74 : memref<1x128xf32, #tpu.memory_space<vmem>>) target_semaphore(%76 : memref<!tpu.dma_semaphore, #tpu.memory_space<semaphore_mem>>)
      %77 = arith.index_cast %34 : i32 to index
      %c7 = arith.constant 7 : index
      %78 = memref.load %arg2[%77, %c7] : memref<2x16xi32, #tpu.memory_space<smem>>
      %c0_i32_44 = arith.constant 0 : i32
      %c0_i32_45 = arith.constant 0 : i32
      %79 = tpu.memref_slice %arg3[%78, %c0_i32_45] : memref<64x128xf32, #tpu.memory_space<any>> -> memref<1x128xf32, #tpu.memory_space<any>>
      %c7_i32 = arith.constant 7 : i32
      %c0_i32_46 = arith.constant 0 : i32
      %80 = tpu.memref_slice %arg6[%c7_i32, %c0_i32_46] : memref<32x128xf32, #tpu.memory_space<vmem>> -> memref<1x128xf32, #tpu.memory_space<vmem>>
      %81 = tpu.memref_slice %arg7[%c0_i32_44] : memref<2x!tpu.dma_semaphore, #tpu.memory_space<semaphore_mem>> -> memref<1x!tpu.dma_semaphore, #tpu.memory_space<semaphore_mem>>
      %82 = tpu.memref_squeeze %81 : memref<1x!tpu.dma_semaphore, #tpu.memory_space<semaphore_mem>> -> memref<!tpu.dma_semaphore, #tpu.memory_space<semaphore_mem>>
      tpu.enqueue_dma source(%79 : memref<1x128xf32, #tpu.memory_space<any>>) target(%80 : memref<1x128xf32, #tpu.memory_space<vmem>>) target_semaphore(%82 : memref<!tpu.dma_semaphore, #tpu.memory_space<semaphore_mem>>)
      %c2_i32_47 = arith.constant 2 : i32
      %83 = arith.muli %arg0, %c2_i32_47 : i32
      %c1_i32_48 = arith.constant 1 : i32
      %84 = arith.addi %83, %c1_i32_48 : i32
      %85 = arith.index_cast %84 : i32 to index
      %c0_49 = arith.constant 0 : index
      %86 = memref.load %arg2[%85, %c0_49] : memref<2x16xi32, #tpu.memory_space<smem>>
      %c0_i32_50 = arith.constant 0 : i32
      %c0_i32_51 = arith.constant 0 : i32
      %87 = tpu.memref_slice %arg3[%86, %c0_i32_51] : memref<64x128xf32, #tpu.memory_space<any>> -> memref<1x128xf32, #tpu.memory_space<any>>
      %c8_i32_52 = arith.constant 8 : i32
      %c0_i32_53 = arith.constant 0 : i32
      %88 = tpu.memref_slice %arg6[%c8_i32_52, %c0_i32_53] : memref<32x128xf32, #tpu.memory_space<vmem>> -> memref<1x128xf32, #tpu.memory_space<vmem>>
      %89 = tpu.memref_slice %arg7[%c0_i32_50] : memref<2x!tpu.dma_semaphore, #tpu.memory_space<semaphore_mem>> -> memref<1x!tpu.dma_semaphore, #tpu.memory_space<semaphore_mem>>
      %90 = tpu.memref_squeeze %89 : memref<1x!tpu.dma_semaphore, #tpu.memory_space<semaphore_mem>> -> memref<!tpu.dma_semaphore, #tpu.memory_space<semaphore_mem>>
      tpu.enqueue_dma source(%87 : memref<1x128xf32, #tpu.memory_space<any>>) target(%88 : memref<1x128xf32, #tpu.memory_space<vmem>>) target_semaphore(%90 : memref<!tpu.dma_semaphore, #tpu.memory_space<semaphore_mem>>)
      %91 = arith.index_cast %84 : i32 to index
      %c1_54 = arith.constant 1 : index
      %92 = memref.load %arg2[%91, %c1_54] : memref<2x16xi32, #tpu.memory_space<smem>>
      %c0_i32_55 = arith.constant 0 : i32
      %c0_i32_56 = arith.constant 0 : i32
      %93 = tpu.memref_slice %arg3[%92, %c0_i32_56] : memref<64x128xf32, #tpu.memory_space<any>> -> memref<1x128xf32, #tpu.memory_space<any>>
      %c9_i32 = arith.constant 9 : i32
      %c0_i32_57 = arith.constant 0 : i32
      %94 = tpu.memref_slice %arg6[%c9_i32, %c0_i32_57] : memref<32x128xf32, #tpu.memory_space<vmem>> -> memref<1x128xf32, #tpu.memory_space<vmem>>
      %95 = tpu.memref_slice %arg7[%c0_i32_55] : memref<2x!tpu.dma_semaphore, #tpu.memory_space<semaphore_mem>> -> memref<1x!tpu.dma_semaphore, #tpu.memory_space<semaphore_mem>>
      %96 = tpu.memref_squeeze %95 : memref<1x!tpu.dma_semaphore, #tpu.memory_space<semaphore_mem>> -> memref<!tpu.dma_semaphore, #tpu.memory_space<semaphore_mem>>
      tpu.enqueue_dma source(%93 : memref<1x128xf32, #tpu.memory_space<any>>) target(%94 : memref<1x128xf32, #tpu.memory_space<vmem>>) target_semaphore(%96 : memref<!tpu.dma_semaphore, #tpu.memory_space<semaphore_mem>>)
      %97 = arith.index_cast %84 : i32 to index
      %c2_58 = arith.constant 2 : index
      %98 = memref.load %arg2[%97, %c2_58] : memref<2x16xi32, #tpu.memory_space<smem>>
      %c0_i32_59 = arith.constant 0 : i32
      %c0_i32_60 = arith.constant 0 : i32
      %99 = tpu.memref_slice %arg3[%98, %c0_i32_60] : memref<64x128xf32, #tpu.memory_space<any>> -> memref<1x128xf32, #tpu.memory_space<any>>
      %c10_i32 = arith.constant 10 : i32
      %c0_i32_61 = arith.constant 0 : i32
      %100 = tpu.memref_slice %arg6[%c10_i32, %c0_i32_61] : memref<32x128xf32, #tpu.memory_space<vmem>> -> memref<1x128xf32, #tpu.memory_space<vmem>>
      %101 = tpu.memref_slice %arg7[%c0_i32_59] : memref<2x!tpu.dma_semaphore, #tpu.memory_space<semaphore_mem>> -> memref<1x!tpu.dma_semaphore, #tpu.memory_space<semaphore_mem>>
      %102 = tpu.memref_squeeze %101 : memref<1x!tpu.dma_semaphore, #tpu.memory_space<semaphore_mem>> -> memref<!tpu.dma_semaphore, #tpu.memory_space<semaphore_mem>>
      tpu.enqueue_dma source(%99 : memref<1x128xf32, #tpu.memory_space<any>>) target(%100 : memref<1x128xf32, #tpu.memory_space<vmem>>) target_semaphore(%102 : memref<!tpu.dma_semaphore, #tpu.memory_space<semaphore_mem>>)
      %103 = arith.index_cast %84 : i32 to index
      %c3_62 = arith.constant 3 : index
      %104 = memref.load %arg2[%103, %c3_62] : memref<2x16xi32, #tpu.memory_space<smem>>
      %c0_i32_63 = arith.constant 0 : i32
      %c0_i32_64 = arith.constant 0 : i32
      %105 = tpu.memref_slice %arg3[%104, %c0_i32_64] : memref<64x128xf32, #tpu.memory_space<any>> -> memref<1x128xf32, #tpu.memory_space<any>>
      %c11_i32 = arith.constant 11 : i32
      %c0_i32_65 = arith.constant 0 : i32
      %106 = tpu.memref_slice %arg6[%c11_i32, %c0_i32_65] : memref<32x128xf32, #tpu.memory_space<vmem>> -> memref<1x128xf32, #tpu.memory_space<vmem>>
      %107 = tpu.memref_slice %arg7[%c0_i32_63] : memref<2x!tpu.dma_semaphore, #tpu.memory_space<semaphore_mem>> -> memref<1x!tpu.dma_semaphore, #tpu.memory_space<semaphore_mem>>
      %108 = tpu.memref_squeeze %107 : memref<1x!tpu.dma_semaphore, #tpu.memory_space<semaphore_mem>> -> memref<!tpu.dma_semaphore, #tpu.memory_space<semaphore_mem>>
      tpu.enqueue_dma source(%105 : memref<1x128xf32, #tpu.memory_space<any>>) target(%106 : memref<1x128xf32, #tpu.memory_space<vmem>>) target_semaphore(%108 : memref<!tpu.dma_semaphore, #tpu.memory_space<semaphore_mem>>)
      %109 = arith.index_cast %84 : i32 to index
      %c4_66 = arith.constant 4 : index
      %110 = memref.load %arg2[%109, %c4_66] : memref<2x16xi32, #tpu.memory_space<smem>>
      %c0_i32_67 = arith.constant 0 : i32
      %c0_i32_68 = arith.constant 0 : i32
      %111 = tpu.memref_slice %arg3[%110, %c0_i32_68] : memref<64x128xf32, #tpu.memory_space<any>> -> memref<1x128xf32, #tpu.memory_space<any>>
      %c12_i32 = arith.constant 12 : i32
      %c0_i32_69 = arith.constant 0 : i32
      %112 = tpu.memref_slice %arg6[%c12_i32, %c0_i32_69] : memref<32x128xf32, #tpu.memory_space<vmem>> -> memref<1x128xf32, #tpu.memory_space<vmem>>
      %113 = tpu.memref_slice %arg7[%c0_i32_67] : memref<2x!tpu.dma_semaphore, #tpu.memory_space<semaphore_mem>> -> memref<1x!tpu.dma_semaphore, #tpu.memory_space<semaphore_mem>>
      %114 = tpu.memref_squeeze %113 : memref<1x!tpu.dma_semaphore, #tpu.memory_space<semaphore_mem>> -> memref<!tpu.dma_semaphore, #tpu.memory_space<semaphore_mem>>
      tpu.enqueue_dma source(%111 : memref<1x128xf32, #tpu.memory_space<any>>) target(%112 : memref<1x128xf32, #tpu.memory_space<vmem>>) target_semaphore(%114 : memref<!tpu.dma_semaphore, #tpu.memory_space<semaphore_mem>>)
      %115 = arith.index_cast %84 : i32 to index
      %c5_70 = arith.constant 5 : index
      %116 = memref.load %arg2[%115, %c5_70] : memref<2x16xi32, #tpu.memory_space<smem>>
      %c0_i32_71 = arith.constant 0 : i32
      %c0_i32_72 = arith.constant 0 : i32
      %117 = tpu.memref_slice %arg3[%116, %c0_i32_72] : memref<64x128xf32, #tpu.memory_space<any>> -> memref<1x128xf32, #tpu.memory_space<any>>
      %c13_i32 = arith.constant 13 : i32
      %c0_i32_73 = arith.constant 0 : i32
      %118 = tpu.memref_slice %arg6[%c13_i32, %c0_i32_73] : memref<32x128xf32, #tpu.memory_space<vmem>> -> memref<1x128xf32, #tpu.memory_space<vmem>>
      %119 = tpu.memref_slice %arg7[%c0_i32_71] : memref<2x!tpu.dma_semaphore, #tpu.memory_space<semaphore_mem>> -> memref<1x!tpu.dma_semaphore, #tpu.memory_space<semaphore_mem>>
      %120 = tpu.memref_squeeze %119 : memref<1x!tpu.dma_semaphore, #tpu.memory_space<semaphore_mem>> -> memref<!tpu.dma_semaphore, #tpu.memory_space<semaphore_mem>>
      tpu.enqueue_dma source(%117 : memref<1x128xf32, #tpu.memory_space<any>>) target(%118 : memref<1x128xf32, #tpu.memory_space<vmem>>) target_semaphore(%120 : memref<!tpu.dma_semaphore, #tpu.memory_space<semaphore_mem>>)
      %121 = arith.index_cast %84 : i32 to index
      %c6_74 = arith.constant 6 : index
      %122 = memref.load %arg2[%121, %c6_74] : memref<2x16xi32, #tpu.memory_space<smem>>
      %c0_i32_75 = arith.constant 0 : i32
      %c0_i32_76 = arith.constant 0 : i32
      %123 = tpu.memref_slice %arg3[%122, %c0_i32_76] : memref<64x128xf32, #tpu.memory_space<any>> -> memref<1x128xf32, #tpu.memory_space<any>>
      %c14_i32 = arith.constant 14 : i32
      %c0_i32_77 = arith.constant 0 : i32
      %124 = tpu.memref_slice %arg6[%c14_i32, %c0_i32_77] : memref<32x128xf32, #tpu.memory_space<vmem>> -> memref<1x128xf32, #tpu.memory_space<vmem>>
      %125 = tpu.memref_slice %arg7[%c0_i32_75] : memref<2x!tpu.dma_semaphore, #tpu.memory_space<semaphore_mem>> -> memref<1x!tpu.dma_semaphore, #tpu.memory_space<semaphore_mem>>
      %126 = tpu.memref_squeeze %125 : memref<1x!tpu.dma_semaphore, #tpu.memory_space<semaphore_mem>> -> memref<!tpu.dma_semaphore, #tpu.memory_space<semaphore_mem>>
      tpu.enqueue_dma source(%123 : memref<1x128xf32, #tpu.memory_space<any>>) target(%124 : memref<1x128xf32, #tpu.memory_space<vmem>>) target_semaphore(%126 : memref<!tpu.dma_semaphore, #tpu.memory_space<semaphore_mem>>)
      %127 = arith.index_cast %84 : i32 to index
      %c7_78 = arith.constant 7 : index
      %128 = memref.load %arg2[%127, %c7_78] : memref<2x16xi32, #tpu.memory_space<smem>>
      %c0_i32_79 = arith.constant 0 : i32
      %c0_i32_80 = arith.constant 0 : i32
      %129 = tpu.memref_slice %arg3[%128, %c0_i32_80] : memref<64x128xf32, #tpu.memory_space<any>> -> memref<1x128xf32, #tpu.memory_space<any>>
      %c15_i32 = arith.constant 15 : i32
      %c0_i32_81 = arith.constant 0 : i32
      %130 = tpu.memref_slice %arg6[%c15_i32, %c0_i32_81] : memref<32x128xf32, #tpu.memory_space<vmem>> -> memref<1x128xf32, #tpu.memory_space<vmem>>
      %131 = tpu.memref_slice %arg7[%c0_i32_79] : memref<2x!tpu.dma_semaphore, #tpu.memory_space<semaphore_mem>> -> memref<1x!tpu.dma_semaphore, #tpu.memory_space<semaphore_mem>>
      %132 = tpu.memref_squeeze %131 : memref<1x!tpu.dma_semaphore, #tpu.memory_space<semaphore_mem>> -> memref<!tpu.dma_semaphore, #tpu.memory_space<semaphore_mem>>
      tpu.enqueue_dma source(%129 : memref<1x128xf32, #tpu.memory_space<any>>) target(%130 : memref<1x128xf32, #tpu.memory_space<vmem>>) target_semaphore(%132 : memref<!tpu.dma_semaphore, #tpu.memory_space<semaphore_mem>>)
    } else {
    }
    %c1_i32 = arith.constant 1 : i32
    %4 = arith.addi %arg1, %c1_i32 : i32
    %c2_i32_1 = arith.constant 2 : i32
    %5 = arith.cmpi slt, %4, %c2_i32_1 : i32
    %6 = arith.extui %5 : i1 to i32
    %c0_i32_2 = arith.constant 0 : i32
    %7 = arith.cmpi ne, %6, %c0_i32_2 : i32
    scf.if %7 {
      %c1_i32_16 = arith.constant 1 : i32
      %33 = arith.addi %arg1, %c1_i32_16 : i32
      %c1_i32_17 = arith.constant 1 : i32
      %34 = arith.subi %c1_i32_17, %0 : i32
      %c8_i32_18 = arith.constant 8 : i32
      %35 = arith.muli %33, %c8_i32_18 : i32
      %c2_i32_19 = arith.constant 2 : i32
      %36 = arith.muli %arg0, %c2_i32_19 : i32
      %c0_i32_20 = arith.constant 0 : i32
      %37 = arith.addi %36, %c0_i32_20 : i32
      %c0_i32_21 = arith.constant 0 : i32
      %38 = arith.addi %35, %c0_i32_21 : i32
      %39 = arith.index_cast %37 : i32 to index
      %40 = arith.index_cast %38 : i32 to index
      %41 = memref.load %arg2[%39, %40] : memref<2x16xi32, #tpu.memory_space<smem>>
      %c16_i32_22 = arith.constant 16 : i32
      %42 = arith.muli %34, %c16_i32_22 : i32
      %c0_i32_23 = arith.constant 0 : i32
      %43 = arith.addi %42, %c0_i32_23 : i32
      %c0_i32_24 = arith.constant 0 : i32
      %44 = arith.addi %43, %c0_i32_24 : i32
      %c0_i32_25 = arith.constant 0 : i32
      %45 = tpu.memref_slice %arg3[%41, %c0_i32_25] : memref<64x128xf32, #tpu.memory_space<any>> -> memref<1x128xf32, #tpu.memory_space<any>>
      %c0_i32_26 = arith.constant 0 : i32
      %46 = tpu.memref_slice %arg6[%44, %c0_i32_26] : memref<32x128xf32, #tpu.memory_space<vmem>> -> memref<1x128xf32, #tpu.memory_space<vmem>>
      %47 = tpu.memref_slice %arg7[%34] : memref<2x!tpu.dma_semaphore, #tpu.memory_space<semaphore_mem>> -> memref<1x!tpu.dma_semaphore, #tpu.memory_space<semaphore_mem>>
      %48 = tpu.memref_squeeze %47 : memref<1x!tpu.dma_semaphore, #tpu.memory_space<semaphore_mem>> -> memref<!tpu.dma_semaphore, #tpu.memory_space<semaphore_mem>>
      tpu.enqueue_dma source(%45 : memref<1x128xf32, #tpu.memory_space<any>>) target(%46 : memref<1x128xf32, #tpu.memory_space<vmem>>) target_semaphore(%48 : memref<!tpu.dma_semaphore, #tpu.memory_space<semaphore_mem>>)
      %c1_i32_27 = arith.constant 1 : i32
      %49 = arith.addi %35, %c1_i32_27 : i32
      %50 = arith.index_cast %37 : i32 to index
      %51 = arith.index_cast %49 : i32 to index
      %52 = memref.load %arg2[%50, %51] : memref<2x16xi32, #tpu.memory_space<smem>>
      %c16_i32_28 = arith.constant 16 : i32
      %53 = arith.muli %34, %c16_i32_28 : i32
      %c0_i32_29 = arith.constant 0 : i32
      %54 = arith.addi %53, %c0_i32_29 : i32
      %c1_i32_30 = arith.constant 1 : i32
      %55 = arith.addi %54, %c1_i32_30 : i32
      %c0_i32_31 = arith.constant 0 : i32
      %56 = tpu.memref_slice %arg3[%52, %c0_i32_31] : memref<64x128xf32, #tpu.memory_space<any>> -> memref<1x128xf32, #tpu.memory_space<any>>
      %c0_i32_32 = arith.constant 0 : i32
      %57 = tpu.memref_slice %arg6[%55, %c0_i32_32] : memref<32x128xf32, #tpu.memory_space<vmem>> -> memref<1x128xf32, #tpu.memory_space<vmem>>
      %58 = tpu.memref_slice %arg7[%34] : memref<2x!tpu.dma_semaphore, #tpu.memory_space<semaphore_mem>> -> memref<1x!tpu.dma_semaphore, #tpu.memory_space<semaphore_mem>>
      %59 = tpu.memref_squeeze %58 : memref<1x!tpu.dma_semaphore, #tpu.memory_space<semaphore_mem>> -> memref<!tpu.dma_semaphore, #tpu.memory_space<semaphore_mem>>
      tpu.enqueue_dma source(%56 : memref<1x128xf32, #tpu.memory_space<any>>) target(%57 : memref<1x128xf32, #tpu.memory_space<vmem>>) target_semaphore(%59 : memref<!tpu.dma_semaphore, #tpu.memory_space<semaphore_mem>>)
      %c2_i32_33 = arith.constant 2 : i32
      %60 = arith.addi %35, %c2_i32_33 : i32
      %61 = arith.index_cast %37 : i32 to index
      %62 = arith.index_cast %60 : i32 to index
      %63 = memref.load %arg2[%61, %62] : memref<2x16xi32, #tpu.memory_space<smem>>
      %c16_i32_34 = arith.constant 16 : i32
      %64 = arith.muli %34, %c16_i32_34 : i32
      %c0_i32_35 = arith.constant 0 : i32
      %65 = arith.addi %64, %c0_i32_35 : i32
      %c2_i32_36 = arith.constant 2 : i32
      %66 = arith.addi %65, %c2_i32_36 : i32
      %c0_i32_37 = arith.constant 0 : i32
      %67 = tpu.memref_slice %arg3[%63, %c0_i32_37] : memref<64x128xf32, #tpu.memory_space<any>> -> memref<1x128xf32, #tpu.memory_space<any>>
      %c0_i32_38 = arith.constant 0 : i32
      %68 = tpu.memref_slice %arg6[%66, %c0_i32_38] : memref<32x128xf32, #tpu.memory_space<vmem>> -> memref<1x128xf32, #tpu.memory_space<vmem>>
      %69 = tpu.memref_slice %arg7[%34] : memref<2x!tpu.dma_semaphore, #tpu.memory_space<semaphore_mem>> -> memref<1x!tpu.dma_semaphore, #tpu.memory_space<semaphore_mem>>
      %70 = tpu.memref_squeeze %69 : memref<1x!tpu.dma_semaphore, #tpu.memory_space<semaphore_mem>> -> memref<!tpu.dma_semaphore, #tpu.memory_space<semaphore_mem>>
      tpu.enqueue_dma source(%67 : memref<1x128xf32, #tpu.memory_space<any>>) target(%68 : memref<1x128xf32, #tpu.memory_space<vmem>>) target_semaphore(%70 : memref<!tpu.dma_semaphore, #tpu.memory_space<semaphore_mem>>)
      %c3_i32 = arith.constant 3 : i32
      %71 = arith.addi %35, %c3_i32 : i32
      %72 = arith.index_cast %37 : i32 to index
      %73 = arith.index_cast %71 : i32 to index
      %74 = memref.load %arg2[%72, %73] : memref<2x16xi32, #tpu.memory_space<smem>>
      %c16_i32_39 = arith.constant 16 : i32
      %75 = arith.muli %34, %c16_i32_39 : i32
      %c0_i32_40 = arith.constant 0 : i32
      %76 = arith.addi %75, %c0_i32_40 : i32
      %c3_i32_41 = arith.constant 3 : i32
      %77 = arith.addi %76, %c3_i32_41 : i32
      %c0_i32_42 = arith.constant 0 : i32
      %78 = tpu.memref_slice %arg3[%74, %c0_i32_42] : memref<64x128xf32, #tpu.memory_space<any>> -> memref<1x128xf32, #tpu.memory_space<any>>
      %c0_i32_43 = arith.constant 0 : i32
      %79 = tpu.memref_slice %arg6[%77, %c0_i32_43] : memref<32x128xf32, #tpu.memory_space<vmem>> -> memref<1x128xf32, #tpu.memory_space<vmem>>
      %80 = tpu.memref_slice %arg7[%34] : memref<2x!tpu.dma_semaphore, #tpu.memory_space<semaphore_mem>> -> memref<1x!tpu.dma_semaphore, #tpu.memory_space<semaphore_mem>>
      %81 = tpu.memref_squeeze %80 : memref<1x!tpu.dma_semaphore, #tpu.memory_space<semaphore_mem>> -> memref<!tpu.dma_semaphore, #tpu.memory_space<semaphore_mem>>
      tpu.enqueue_dma source(%78 : memref<1x128xf32, #tpu.memory_space<any>>) target(%79 : memref<1x128xf32, #tpu.memory_space<vmem>>) target_semaphore(%81 : memref<!tpu.dma_semaphore, #tpu.memory_space<semaphore_mem>>)
      %c4_i32 = arith.constant 4 : i32
      %82 = arith.addi %35, %c4_i32 : i32
      %83 = arith.index_cast %37 : i32 to index
      %84 = arith.index_cast %82 : i32 to index
      %85 = memref.load %arg2[%83, %84] : memref<2x16xi32, #tpu.memory_space<smem>>
      %c16_i32_44 = arith.constant 16 : i32
      %86 = arith.muli %34, %c16_i32_44 : i32
      %c0_i32_45 = arith.constant 0 : i32
      %87 = arith.addi %86, %c0_i32_45 : i32
      %c4_i32_46 = arith.constant 4 : i32
      %88 = arith.addi %87, %c4_i32_46 : i32
      %c0_i32_47 = arith.constant 0 : i32
      %89 = tpu.memref_slice %arg3[%85, %c0_i32_47] : memref<64x128xf32, #tpu.memory_space<any>> -> memref<1x128xf32, #tpu.memory_space<any>>
      %c0_i32_48 = arith.constant 0 : i32
      %90 = tpu.memref_slice %arg6[%88, %c0_i32_48] : memref<32x128xf32, #tpu.memory_space<vmem>> -> memref<1x128xf32, #tpu.memory_space<vmem>>
      %91 = tpu.memref_slice %arg7[%34] : memref<2x!tpu.dma_semaphore, #tpu.memory_space<semaphore_mem>> -> memref<1x!tpu.dma_semaphore, #tpu.memory_space<semaphore_mem>>
      %92 = tpu.memref_squeeze %91 : memref<1x!tpu.dma_semaphore, #tpu.memory_space<semaphore_mem>> -> memref<!tpu.dma_semaphore, #tpu.memory_space<semaphore_mem>>
      tpu.enqueue_dma source(%89 : memref<1x128xf32, #tpu.memory_space<any>>) target(%90 : memref<1x128xf32, #tpu.memory_space<vmem>>) target_semaphore(%92 : memref<!tpu.dma_semaphore, #tpu.memory_space<semaphore_mem>>)
      %c5_i32 = arith.constant 5 : i32
      %93 = arith.addi %35, %c5_i32 : i32
      %94 = arith.index_cast %37 : i32 to index
      %95 = arith.index_cast %93 : i32 to index
      %96 = memref.load %arg2[%94, %95] : memref<2x16xi32, #tpu.memory_space<smem>>
      %c16_i32_49 = arith.constant 16 : i32
      %97 = arith.muli %34, %c16_i32_49 : i32
      %c0_i32_50 = arith.constant 0 : i32
      %98 = arith.addi %97, %c0_i32_50 : i32
      %c5_i32_51 = arith.constant 5 : i32
      %99 = arith.addi %98, %c5_i32_51 : i32
      %c0_i32_52 = arith.constant 0 : i32
      %100 = tpu.memref_slice %arg3[%96, %c0_i32_52] : memref<64x128xf32, #tpu.memory_space<any>> -> memref<1x128xf32, #tpu.memory_space<any>>
      %c0_i32_53 = arith.constant 0 : i32
      %101 = tpu.memref_slice %arg6[%99, %c0_i32_53] : memref<32x128xf32, #tpu.memory_space<vmem>> -> memref<1x128xf32, #tpu.memory_space<vmem>>
      %102 = tpu.memref_slice %arg7[%34] : memref<2x!tpu.dma_semaphore, #tpu.memory_space<semaphore_mem>> -> memref<1x!tpu.dma_semaphore, #tpu.memory_space<semaphore_mem>>
      %103 = tpu.memref_squeeze %102 : memref<1x!tpu.dma_semaphore, #tpu.memory_space<semaphore_mem>> -> memref<!tpu.dma_semaphore, #tpu.memory_space<semaphore_mem>>
      tpu.enqueue_dma source(%100 : memref<1x128xf32, #tpu.memory_space<any>>) target(%101 : memref<1x128xf32, #tpu.memory_space<vmem>>) target_semaphore(%103 : memref<!tpu.dma_semaphore, #tpu.memory_space<semaphore_mem>>)
      %c6_i32 = arith.constant 6 : i32
      %104 = arith.addi %35, %c6_i32 : i32
      %105 = arith.index_cast %37 : i32 to index
      %106 = arith.index_cast %104 : i32 to index
      %107 = memref.load %arg2[%105, %106] : memref<2x16xi32, #tpu.memory_space<smem>>
      %c16_i32_54 = arith.constant 16 : i32
      %108 = arith.muli %34, %c16_i32_54 : i32
      %c0_i32_55 = arith.constant 0 : i32
      %109 = arith.addi %108, %c0_i32_55 : i32
      %c6_i32_56 = arith.constant 6 : i32
      %110 = arith.addi %109, %c6_i32_56 : i32
      %c0_i32_57 = arith.constant 0 : i32
      %111 = tpu.memref_slice %arg3[%107, %c0_i32_57] : memref<64x128xf32, #tpu.memory_space<any>> -> memref<1x128xf32, #tpu.memory_space<any>>
      %c0_i32_58 = arith.constant 0 : i32
      %112 = tpu.memref_slice %arg6[%110, %c0_i32_58] : memref<32x128xf32, #tpu.memory_space<vmem>> -> memref<1x128xf32, #tpu.memory_space<vmem>>
      %113 = tpu.memref_slice %arg7[%34] : memref<2x!tpu.dma_semaphore, #tpu.memory_space<semaphore_mem>> -> memref<1x!tpu.dma_semaphore, #tpu.memory_space<semaphore_mem>>
      %114 = tpu.memref_squeeze %113 : memref<1x!tpu.dma_semaphore, #tpu.memory_space<semaphore_mem>> -> memref<!tpu.dma_semaphore, #tpu.memory_space<semaphore_mem>>
      tpu.enqueue_dma source(%111 : memref<1x128xf32, #tpu.memory_space<any>>) target(%112 : memref<1x128xf32, #tpu.memory_space<vmem>>) target_semaphore(%114 : memref<!tpu.dma_semaphore, #tpu.memory_space<semaphore_mem>>)
      %c7_i32 = arith.constant 7 : i32
      %115 = arith.addi %35, %c7_i32 : i32
      %116 = arith.index_cast %37 : i32 to index
      %117 = arith.index_cast %115 : i32 to index
      %118 = memref.load %arg2[%116, %117] : memref<2x16xi32, #tpu.memory_space<smem>>
      %c16_i32_59 = arith.constant 16 : i32
      %119 = arith.muli %34, %c16_i32_59 : i32
      %c0_i32_60 = arith.constant 0 : i32
      %120 = arith.addi %119, %c0_i32_60 : i32
      %c7_i32_61 = arith.constant 7 : i32
      %121 = arith.addi %120, %c7_i32_61 : i32
      %c0_i32_62 = arith.constant 0 : i32
      %122 = tpu.memref_slice %arg3[%118, %c0_i32_62] : memref<64x128xf32, #tpu.memory_space<any>> -> memref<1x128xf32, #tpu.memory_space<any>>
      %c0_i32_63 = arith.constant 0 : i32
      %123 = tpu.memref_slice %arg6[%121, %c0_i32_63] : memref<32x128xf32, #tpu.memory_space<vmem>> -> memref<1x128xf32, #tpu.memory_space<vmem>>
      %124 = tpu.memref_slice %arg7[%34] : memref<2x!tpu.dma_semaphore, #tpu.memory_space<semaphore_mem>> -> memref<1x!tpu.dma_semaphore, #tpu.memory_space<semaphore_mem>>
      %125 = tpu.memref_squeeze %124 : memref<1x!tpu.dma_semaphore, #tpu.memory_space<semaphore_mem>> -> memref<!tpu.dma_semaphore, #tpu.memory_space<semaphore_mem>>
      tpu.enqueue_dma source(%122 : memref<1x128xf32, #tpu.memory_space<any>>) target(%123 : memref<1x128xf32, #tpu.memory_space<vmem>>) target_semaphore(%125 : memref<!tpu.dma_semaphore, #tpu.memory_space<semaphore_mem>>)
      %c2_i32_64 = arith.constant 2 : i32
      %126 = arith.muli %arg0, %c2_i32_64 : i32
      %c1_i32_65 = arith.constant 1 : i32
      %127 = arith.addi %126, %c1_i32_65 : i32
      %c0_i32_66 = arith.constant 0 : i32
      %128 = arith.addi %35, %c0_i32_66 : i32
      %129 = arith.index_cast %127 : i32 to index
      %130 = arith.index_cast %128 : i32 to index
      %131 = memref.load %arg2[%129, %130] : memref<2x16xi32, #tpu.memory_space<smem>>
      %c16_i32_67 = arith.constant 16 : i32
      %132 = arith.muli %34, %c16_i32_67 : i32
      %c8_i32_68 = arith.constant 8 : i32
      %133 = arith.addi %132, %c8_i32_68 : i32
      %c0_i32_69 = arith.constant 0 : i32
      %134 = arith.addi %133, %c0_i32_69 : i32
      %c0_i32_70 = arith.constant 0 : i32
      %135 = tpu.memref_slice %arg3[%131, %c0_i32_70] : memref<64x128xf32, #tpu.memory_space<any>> -> memref<1x128xf32, #tpu.memory_space<any>>
      %c0_i32_71 = arith.constant 0 : i32
      %136 = tpu.memref_slice %arg6[%134, %c0_i32_71] : memref<32x128xf32, #tpu.memory_space<vmem>> -> memref<1x128xf32, #tpu.memory_space<vmem>>
      %137 = tpu.memref_slice %arg7[%34] : memref<2x!tpu.dma_semaphore, #tpu.memory_space<semaphore_mem>> -> memref<1x!tpu.dma_semaphore, #tpu.memory_space<semaphore_mem>>
      %138 = tpu.memref_squeeze %137 : memref<1x!tpu.dma_semaphore, #tpu.memory_space<semaphore_mem>> -> memref<!tpu.dma_semaphore, #tpu.memory_space<semaphore_mem>>
      tpu.enqueue_dma source(%135 : memref<1x128xf32, #tpu.memory_space<any>>) target(%136 : memref<1x128xf32, #tpu.memory_space<vmem>>) target_semaphore(%138 : memref<!tpu.dma_semaphore, #tpu.memory_space<semaphore_mem>>)
      %c1_i32_72 = arith.constant 1 : i32
      %139 = arith.addi %35, %c1_i32_72 : i32
      %140 = arith.index_cast %127 : i32 to index
      %141 = arith.index_cast %139 : i32 to index
      %142 = memref.load %arg2[%140, %141] : memref<2x16xi32, #tpu.memory_space<smem>>
      %c16_i32_73 = arith.constant 16 : i32
      %143 = arith.muli %34, %c16_i32_73 : i32
      %c8_i32_74 = arith.constant 8 : i32
      %144 = arith.addi %143, %c8_i32_74 : i32
      %c1_i32_75 = arith.constant 1 : i32
      %145 = arith.addi %144, %c1_i32_75 : i32
      %c0_i32_76 = arith.constant 0 : i32
      %146 = tpu.memref_slice %arg3[%142, %c0_i32_76] : memref<64x128xf32, #tpu.memory_space<any>> -> memref<1x128xf32, #tpu.memory_space<any>>
      %c0_i32_77 = arith.constant 0 : i32
      %147 = tpu.memref_slice %arg6[%145, %c0_i32_77] : memref<32x128xf32, #tpu.memory_space<vmem>> -> memref<1x128xf32, #tpu.memory_space<vmem>>
      %148 = tpu.memref_slice %arg7[%34] : memref<2x!tpu.dma_semaphore, #tpu.memory_space<semaphore_mem>> -> memref<1x!tpu.dma_semaphore, #tpu.memory_space<semaphore_mem>>
      %149 = tpu.memref_squeeze %148 : memref<1x!tpu.dma_semaphore, #tpu.memory_space<semaphore_mem>> -> memref<!tpu.dma_semaphore, #tpu.memory_space<semaphore_mem>>
      tpu.enqueue_dma source(%146 : memref<1x128xf32, #tpu.memory_space<any>>) target(%147 : memref<1x128xf32, #tpu.memory_space<vmem>>) target_semaphore(%149 : memref<!tpu.dma_semaphore, #tpu.memory_space<semaphore_mem>>)
      %c2_i32_78 = arith.constant 2 : i32
      %150 = arith.addi %35, %c2_i32_78 : i32
      %151 = arith.index_cast %127 : i32 to index
      %152 = arith.index_cast %150 : i32 to index
      %153 = memref.load %arg2[%151, %152] : memref<2x16xi32, #tpu.memory_space<smem>>
      %c16_i32_79 = arith.constant 16 : i32
      %154 = arith.muli %34, %c16_i32_79 : i32
      %c8_i32_80 = arith.constant 8 : i32
      %155 = arith.addi %154, %c8_i32_80 : i32
      %c2_i32_81 = arith.constant 2 : i32
      %156 = arith.addi %155, %c2_i32_81 : i32
      %c0_i32_82 = arith.constant 0 : i32
      %157 = tpu.memref_slice %arg3[%153, %c0_i32_82] : memref<64x128xf32, #tpu.memory_space<any>> -> memref<1x128xf32, #tpu.memory_space<any>>
      %c0_i32_83 = arith.constant 0 : i32
      %158 = tpu.memref_slice %arg6[%156, %c0_i32_83] : memref<32x128xf32, #tpu.memory_space<vmem>> -> memref<1x128xf32, #tpu.memory_space<vmem>>
      %159 = tpu.memref_slice %arg7[%34] : memref<2x!tpu.dma_semaphore, #tpu.memory_space<semaphore_mem>> -> memref<1x!tpu.dma_semaphore, #tpu.memory_space<semaphore_mem>>
      %160 = tpu.memref_squeeze %159 : memref<1x!tpu.dma_semaphore, #tpu.memory_space<semaphore_mem>> -> memref<!tpu.dma_semaphore, #tpu.memory_space<semaphore_mem>>
      tpu.enqueue_dma source(%157 : memref<1x128xf32, #tpu.memory_space<any>>) target(%158 : memref<1x128xf32, #tpu.memory_space<vmem>>) target_semaphore(%160 : memref<!tpu.dma_semaphore, #tpu.memory_space<semaphore_mem>>)
      %c3_i32_84 = arith.constant 3 : i32
      %161 = arith.addi %35, %c3_i32_84 : i32
      %162 = arith.index_cast %127 : i32 to index
      %163 = arith.index_cast %161 : i32 to index
      %164 = memref.load %arg2[%162, %163] : memref<2x16xi32, #tpu.memory_space<smem>>
      %c16_i32_85 = arith.constant 16 : i32
      %165 = arith.muli %34, %c16_i32_85 : i32
      %c8_i32_86 = arith.constant 8 : i32
      %166 = arith.addi %165, %c8_i32_86 : i32
      %c3_i32_87 = arith.constant 3 : i32
      %167 = arith.addi %166, %c3_i32_87 : i32
      %c0_i32_88 = arith.constant 0 : i32
      %168 = tpu.memref_slice %arg3[%164, %c0_i32_88] : memref<64x128xf32, #tpu.memory_space<any>> -> memref<1x128xf32, #tpu.memory_space<any>>
      %c0_i32_89 = arith.constant 0 : i32
      %169 = tpu.memref_slice %arg6[%167, %c0_i32_89] : memref<32x128xf32, #tpu.memory_space<vmem>> -> memref<1x128xf32, #tpu.memory_space<vmem>>
      %170 = tpu.memref_slice %arg7[%34] : memref<2x!tpu.dma_semaphore, #tpu.memory_space<semaphore_mem>> -> memref<1x!tpu.dma_semaphore, #tpu.memory_space<semaphore_mem>>
      %171 = tpu.memref_squeeze %170 : memref<1x!tpu.dma_semaphore, #tpu.memory_space<semaphore_mem>> -> memref<!tpu.dma_semaphore, #tpu.memory_space<semaphore_mem>>
      tpu.enqueue_dma source(%168 : memref<1x128xf32, #tpu.memory_space<any>>) target(%169 : memref<1x128xf32, #tpu.memory_space<vmem>>) target_semaphore(%171 : memref<!tpu.dma_semaphore, #tpu.memory_space<semaphore_mem>>)
      %c4_i32_90 = arith.constant 4 : i32
      %172 = arith.addi %35, %c4_i32_90 : i32
      %173 = arith.index_cast %127 : i32 to index
      %174 = arith.index_cast %172 : i32 to index
      %175 = memref.load %arg2[%173, %174] : memref<2x16xi32, #tpu.memory_space<smem>>
      %c16_i32_91 = arith.constant 16 : i32
      %176 = arith.muli %34, %c16_i32_91 : i32
      %c8_i32_92 = arith.constant 8 : i32
      %177 = arith.addi %176, %c8_i32_92 : i32
      %c4_i32_93 = arith.constant 4 : i32
      %178 = arith.addi %177, %c4_i32_93 : i32
      %c0_i32_94 = arith.constant 0 : i32
      %179 = tpu.memref_slice %arg3[%175, %c0_i32_94] : memref<64x128xf32, #tpu.memory_space<any>> -> memref<1x128xf32, #tpu.memory_space<any>>
      %c0_i32_95 = arith.constant 0 : i32
      %180 = tpu.memref_slice %arg6[%178, %c0_i32_95] : memref<32x128xf32, #tpu.memory_space<vmem>> -> memref<1x128xf32, #tpu.memory_space<vmem>>
      %181 = tpu.memref_slice %arg7[%34] : memref<2x!tpu.dma_semaphore, #tpu.memory_space<semaphore_mem>> -> memref<1x!tpu.dma_semaphore, #tpu.memory_space<semaphore_mem>>
      %182 = tpu.memref_squeeze %181 : memref<1x!tpu.dma_semaphore, #tpu.memory_space<semaphore_mem>> -> memref<!tpu.dma_semaphore, #tpu.memory_space<semaphore_mem>>
      tpu.enqueue_dma source(%179 : memref<1x128xf32, #tpu.memory_space<any>>) target(%180 : memref<1x128xf32, #tpu.memory_space<vmem>>) target_semaphore(%182 : memref<!tpu.dma_semaphore, #tpu.memory_space<semaphore_mem>>)
      %c5_i32_96 = arith.constant 5 : i32
      %183 = arith.addi %35, %c5_i32_96 : i32
      %184 = arith.index_cast %127 : i32 to index
      %185 = arith.index_cast %183 : i32 to index
      %186 = memref.load %arg2[%184, %185] : memref<2x16xi32, #tpu.memory_space<smem>>
      %c16_i32_97 = arith.constant 16 : i32
      %187 = arith.muli %34, %c16_i32_97 : i32
      %c8_i32_98 = arith.constant 8 : i32
      %188 = arith.addi %187, %c8_i32_98 : i32
      %c5_i32_99 = arith.constant 5 : i32
      %189 = arith.addi %188, %c5_i32_99 : i32
      %c0_i32_100 = arith.constant 0 : i32
      %190 = tpu.memref_slice %arg3[%186, %c0_i32_100] : memref<64x128xf32, #tpu.memory_space<any>> -> memref<1x128xf32, #tpu.memory_space<any>>
      %c0_i32_101 = arith.constant 0 : i32
      %191 = tpu.memref_slice %arg6[%189, %c0_i32_101] : memref<32x128xf32, #tpu.memory_space<vmem>> -> memref<1x128xf32, #tpu.memory_space<vmem>>
      %192 = tpu.memref_slice %arg7[%34] : memref<2x!tpu.dma_semaphore, #tpu.memory_space<semaphore_mem>> -> memref<1x!tpu.dma_semaphore, #tpu.memory_space<semaphore_mem>>
      %193 = tpu.memref_squeeze %192 : memref<1x!tpu.dma_semaphore, #tpu.memory_space<semaphore_mem>> -> memref<!tpu.dma_semaphore, #tpu.memory_space<semaphore_mem>>
      tpu.enqueue_dma source(%190 : memref<1x128xf32, #tpu.memory_space<any>>) target(%191 : memref<1x128xf32, #tpu.memory_space<vmem>>) target_semaphore(%193 : memref<!tpu.dma_semaphore, #tpu.memory_space<semaphore_mem>>)
      %c6_i32_102 = arith.constant 6 : i32
      %194 = arith.addi %35, %c6_i32_102 : i32
      %195 = arith.index_cast %127 : i32 to index
      %196 = arith.index_cast %194 : i32 to index
      %197 = memref.load %arg2[%195, %196] : memref<2x16xi32, #tpu.memory_space<smem>>
      %c16_i32_103 = arith.constant 16 : i32
      %198 = arith.muli %34, %c16_i32_103 : i32
      %c8_i32_104 = arith.constant 8 : i32
      %199 = arith.addi %198, %c8_i32_104 : i32
      %c6_i32_105 = arith.constant 6 : i32
      %200 = arith.addi %199, %c6_i32_105 : i32
      %c0_i32_106 = arith.constant 0 : i32
      %201 = tpu.memref_slice %arg3[%197, %c0_i32_106] : memref<64x128xf32, #tpu.memory_space<any>> -> memref<1x128xf32, #tpu.memory_space<any>>
      %c0_i32_107 = arith.constant 0 : i32
      %202 = tpu.memref_slice %arg6[%200, %c0_i32_107] : memref<32x128xf32, #tpu.memory_space<vmem>> -> memref<1x128xf32, #tpu.memory_space<vmem>>
      %203 = tpu.memref_slice %arg7[%34] : memref<2x!tpu.dma_semaphore, #tpu.memory_space<semaphore_mem>> -> memref<1x!tpu.dma_semaphore, #tpu.memory_space<semaphore_mem>>
      %204 = tpu.memref_squeeze %203 : memref<1x!tpu.dma_semaphore, #tpu.memory_space<semaphore_mem>> -> memref<!tpu.dma_semaphore, #tpu.memory_space<semaphore_mem>>
      tpu.enqueue_dma source(%201 : memref<1x128xf32, #tpu.memory_space<any>>) target(%202 : memref<1x128xf32, #tpu.memory_space<vmem>>) target_semaphore(%204 : memref<!tpu.dma_semaphore, #tpu.memory_space<semaphore_mem>>)
      %c7_i32_108 = arith.constant 7 : i32
      %205 = arith.addi %35, %c7_i32_108 : i32
      %206 = arith.index_cast %127 : i32 to index
      %207 = arith.index_cast %205 : i32 to index
      %208 = memref.load %arg2[%206, %207] : memref<2x16xi32, #tpu.memory_space<smem>>
      %c16_i32_109 = arith.constant 16 : i32
      %209 = arith.muli %34, %c16_i32_109 : i32
      %c8_i32_110 = arith.constant 8 : i32
      %210 = arith.addi %209, %c8_i32_110 : i32
      %c7_i32_111 = arith.constant 7 : i32
      %211 = arith.addi %210, %c7_i32_111 : i32
      %c0_i32_112 = arith.constant 0 : i32
      %212 = tpu.memref_slice %arg3[%208, %c0_i32_112] : memref<64x128xf32, #tpu.memory_space<any>> -> memref<1x128xf32, #tpu.memory_space<any>>
      %c0_i32_113 = arith.constant 0 : i32
      %213 = tpu.memref_slice %arg6[%211, %c0_i32_113] : memref<32x128xf32, #tpu.memory_space<vmem>> -> memref<1x128xf32, #tpu.memory_space<vmem>>
      %214 = tpu.memref_slice %arg7[%34] : memref<2x!tpu.dma_semaphore, #tpu.memory_space<semaphore_mem>> -> memref<1x!tpu.dma_semaphore, #tpu.memory_space<semaphore_mem>>
      %215 = tpu.memref_squeeze %214 : memref<1x!tpu.dma_semaphore, #tpu.memory_space<semaphore_mem>> -> memref<!tpu.dma_semaphore, #tpu.memory_space<semaphore_mem>>
      tpu.enqueue_dma source(%212 : memref<1x128xf32, #tpu.memory_space<any>>) target(%213 : memref<1x128xf32, #tpu.memory_space<vmem>>) target_semaphore(%215 : memref<!tpu.dma_semaphore, #tpu.memory_space<semaphore_mem>>)
    } else {
    }
    %c16_i32 = arith.constant 16 : i32
    %8 = arith.muli %0, %c16_i32 : i32
    %9 = tpu.assume_multiple %8, 8 : i32
    %c0_i32_3 = arith.constant 0 : i32
    %10 = tpu.memref_slice %arg6[%9, %c0_i32_3] : memref<32x128xf32, #tpu.memory_space<vmem>> -> memref<16x128xf32, #tpu.memory_space<vmem>>
    %c0_i32_4 = arith.constant 0 : i32
    %11 = tpu.memref_slice %arg6[%9, %c0_i32_4] : memref<32x128xf32, #tpu.memory_space<vmem>> -> memref<16x128xf32, #tpu.memory_space<vmem>>
    %12 = tpu.memref_slice %arg7[%0] : memref<2x!tpu.dma_semaphore, #tpu.memory_space<semaphore_mem>> -> memref<1x!tpu.dma_semaphore, #tpu.memory_space<semaphore_mem>>
    %13 = tpu.memref_squeeze %12 : memref<1x!tpu.dma_semaphore, #tpu.memory_space<semaphore_mem>> -> memref<!tpu.dma_semaphore, #tpu.memory_space<semaphore_mem>>
    tpu.wait_dma2 semaphore(%13 : memref<!tpu.dma_semaphore, #tpu.memory_space<semaphore_mem>>) src(%10 : memref<16x128xf32, #tpu.memory_space<vmem>>) dst(%11 : memref<16x128xf32, #tpu.memory_space<vmem>>)
    %c0 = arith.constant 0 : index
    %c0_5 = arith.constant 0 : index
    %14 = vector.load %arg4[%c0, %c0_5] : memref<8x128xf32, #tpu.memory_space<vmem>>, vector<8x128xf32>
    %c16_i32_6 = arith.constant 16 : i32
    %15 = arith.muli %0, %c16_i32_6 : i32
    %c0_i32_7 = arith.constant 0 : i32
    %16 = arith.addi %15, %c0_i32_7 : i32
    %17 = tpu.assume_multiple %16, 8 : i32
    %18 = arith.index_cast %17 : i32 to index
    %c0_8 = arith.constant 0 : index
    %19 = vector.load %arg6[%18, %c0_8] : memref<32x128xf32, #tpu.memory_space<vmem>>, vector<8x128xf32>
    %20 = arith.addf %19, %14 : vector<8x128xf32>
    %c0_9 = arith.constant 0 : index
    %c0_10 = arith.constant 0 : index
    %c0_11 = arith.constant 0 : index
    %21 = vector.load %arg5[%c0_9, %c0_10, %c0_11] : memref<2x8x128xf32, #tpu.memory_space<vmem>>, vector<1x8x128xf32>
    %22 = vector.shape_cast %21 : vector<1x8x128xf32> to vector<8x128xf32>
    %23 = vector.shape_cast %20 : vector<8x128xf32> to vector<1x8x128xf32>
    tpu.vector_store %arg5[%c0_9, %c0_10, %c0_11], %23 {strides = array<i32>} : memref<2x8x128xf32, #tpu.memory_space<vmem>>, vector<1x8x128xf32>,
    %c16_i32_12 = arith.constant 16 : i32
    %24 = arith.muli %0, %c16_i32_12 : i32
    %c8_i32 = arith.constant 8 : i32
    %25 = arith.addi %24, %c8_i32 : i32
    %26 = tpu.assume_multiple %25, 8 : i32
    %27 = arith.index_cast %26 : i32 to index
    %c0_13 = arith.constant 0 : index
    %28 = vector.load %arg6[%27, %c0_13] : memref<32x128xf32, #tpu.memory_space<vmem>>, vector<8x128xf32>
    %29 = arith.addf %28, %14 : vector<8x128xf32>
    %c1 = arith.constant 1 : index
    %c0_14 = arith.constant 0 : index
    %c0_15 = arith.constant 0 : index
    %30 = vector.load %arg5[%c1, %c0_14, %c0_15] : memref<2x8x128xf32, #tpu.memory_space<vmem>>, vector<1x8x128xf32>
    %31 = vector.shape_cast %30 : vector<1x8x128xf32> to vector<8x128xf32>
    %32 = vector.shape_cast %29 : vector<8x128xf32> to vector<1x8x128xf32>
    tpu.vector_store %arg5[%c1, %c0_14, %c0_15], %32 {strides = array<i32>} : memref<2x8x128xf32, #tpu.memory_space<vmem>>, vector<1x8x128xf32>,
    return
  }
  func.func @transform_1(%arg0: i32, %arg1: i32, %arg2: memref<2x16xi32, #tpu.memory_space<smem>>) -> (i32, i32) {
    %c0_i32 = arith.constant 0 : i32
    %c0_i32_0 = arith.constant 0 : i32
    return %arg1, %c0_i32 : i32, i32
  }
  func.func @transform_2(%arg0: i32, %arg1: i32, %arg2: memref<2x16xi32, #tpu.memory_space<smem>>) -> (i32, i32, i32) {
    %c0_i32 = arith.constant 0 : i32
    %c0_i32_0 = arith.constant 0 : i32
    return %arg0, %arg1, %c0_i32 : i32, i32, i32
  }
}

</mosaic_0001>

<bundles_post_ra>
// kernel: tpu_custom_call.1
= control target key start
LH: loop header
LB: loop body
LE: loop exit
PB: predicated region body
PF: predicated region fallthrough
CT: control target
= control target key end

     0   :  { %s3203_s0 = inlined_call_operand.hbm [shape: s32[2,16], index: 0, kind: input, shape index: {}]   ;;  %s3204_s1 = inlined_call_operand.hbm [shape: f32[64,128], index: 1, kind: input, shape index: {}]   ;;  %s3205_s2 = inlined_call_operand.hbm [shape: f32[16,128], index: 2, kind: input, shape index: {}]   ;;  %s3206_s3 = inlined_call_operand.hbm [shape: f32[2,16,128], index: 3, kind: output, shape index: {}]  }
   0x1   :  { %3241 = sst [smem:[#allocation102_spill]] %s3205_s2  ;;  %s1239_s14 = scalar_lea.hbm %s3203_s0, 32 }
   0x2   :  { %3242 = sst [smem:[#allocation103_spill]] %s3206_s3  ;;  %p1240_p0 = scmp.ne.s32.totalorder %s3203_s0, %s1239_s14 }
   0x3   :  { %p1243_p1 = scmp.lt.u32.totalorder %s1239_s14, %s3203_s0 }
   0x5   :  { %p1245_p2 = pnand %p1243_p1, %p1240_p0 }
   0x7   :  { %1248 = shalt.err (!%p1245_p2)  }
   0x8   :  { %s2199_s19 = smov [#allocation5]  }
   0x9   :  { %9 = dma.hbm_to_smem %s3203_s0, 32, %s2199_s19, [#allocation4] }
   0xa   :  { %2163 = dma.done.wait [#allocation4], 32 }
   0xb   :  { %2164 = vsyncadd [#allocation4], 4294967264 }
   0xc   :  { %11 = sfence }
   0xd   :  { %12 = vsyncpa [#allocation7], 0 }
   0xe   :  { %14 = vsyncpa [#allocation7 + $0x1], 0 }
   0xf   :  { %15 = vsyncpa [#allocation8], 0 }
  0x10   :  { %17 = vsyncpa [#allocation8 + $0x1], 0  ;;  %s2253_s22 = smov 0   ;;  %s2255_s23 = smov 0  }
  0x11   :  { %s2257_s24 = smov 0   ;;  %s2259_s25 = smov 0  }
  0x12   :  { %s2261_s26 = smov 0   ;;  %s2263_s27 = smov 0  }
  0x13 LB: > { %3243 = sst [smem:[#allocation80_spill]] %s2177_s22  ;;  %s1019_s0 = sadd.s32 4294967295, %s2197_s27   ;;  %s2197_s27 = sphi %s2263_s27, %s23_s27   ;;  %s2193_s26 = sphi %s2261_s26, %s3308_s26   ;;  %s2189_s25 = sphi %s2259_s25, %s3307_s25   ;;  %s2185_s24 = sphi %s2257_s24, %s3306_s24   ;;  %s2181_s23 = sphi %s2255_s23, %s3305_s23   ;;  %s2177_s22 = sphi %s2253_s22, %s3304_s22  }
  0x14   : > { %3244 = sst [smem:[#allocation81_spill]] %s2181_s23  ;;  %s1020_s28 = sadd.s32 4294967294, %s2197_s27  }
  0x15   : > { %3245 = sst [smem:[#allocation82_spill]] %s2185_s24  ;;  %s32_s29 = sadd.s32 1, %s2193_s26 }
  0x16   : > { %3246 = sst [smem:[#allocation83_spill]] %s2189_s25  ;;  %s42_s30 = sadd.s32 1, %s2185_s24 }
  0x17   : > { %3247 = sst [smem:[#allocation84_spill]] %s2193_s26  ;;  %p33_p3 = scmp.ge.s32.totalorder %s32_s29, 2 }
  0x18   : > { %3248 = sst [smem:[#allocation85_spill]] %s2197_s27  ;;  %p49_p4 = scmp.ne.s32.totalorder %s2185_s24, %s2181_s23 }
  0x19   : > { %p50_p5 = scmp.eq.s32.totalorder %s2197_s27, 0  ;;  %p55_p6 = scmp.ne.s32.totalorder %s2181_s23, %s2177_s22 }
  0x1a   : > { %s3310_s29 = smov (%p33_p3, %s32_s29), 0  ;;  %p56_p8 = scmp.eq.s32.totalorder %s1019_s0, 0 }
  0x1b   : > { %3249 = sst [smem:[#allocation86_spill]] %s3310_s29  ;;  %p2294_p7 = por %p50_p5, %p49_p4 }
  0x1c   : > { %s39_s5 = ssub.s32 %s2193_s26, %s3310_s29  ;;  %p81_p9 = scmp.eq.s32.totalorder %s1019_s0, 1 }
  0x1d   : > { %p40_p10 = scmp.eq.s32.totalorder %s39_s5, 0  ;;  %p2300_p11 = por %p56_p8, %p55_p6 }
  0x1e   : > { %p2304_p12 = por %p81_p9, %p49_p4  ;;  %p87_p13 = scmp.eq.s32.totalorder %s1020_s28, 1 }
  0x1f   : > { %s2309_s8 = scalar_select %p40_p10, %s2185_s24, %s42_s30  }
  0x20   : > { %s3252_s7 = scalar_select %p2304_p12, 1, 0 }
  0x21   : > { %3254 = sst [smem:[#allocation88_spill]] %s2309_s8  ;;  %p2311_p0 = por %p87_p13, %p55_p6 }
  0x22   : > { %3253 = sst [smem:[#allocation87_spill]] %s3252_s7  ;;  %p1168_p2 = scmp.lt.s32.totalorder %s2197_s27, 2 }
  0x23   : > { %s3255_s9 = scalar_select %p2311_p0, 1, 0 }
  0x24   : > { %s107_s10 = sand.u32 1, %s2185_s24   ;;  %s1024_s12 = sshll.u32 %s2193_s26, 7 }
  0x25   : > { %3256 = sst [smem:[#allocation89_spill]] %s3255_s9  ;;  %s1023_s11 = sshll.u32 %s107_s10, 3 }
  0x26   : > { %s3257_s2 = sld [smem:[#allocation102_spill]]  ;;  %s111_s16 = scalar_lea.vmem [#allocation6], %s1023_s11 }
  0x27   : > { %s118_s17 = sshll.u32 %s111_s16, 4  ;;  %p2328_p3 = pnand %p1168_p2, %p2294_p7  ;;  %s2324_s17 = int_to_ptr.vmem [resolvable:$true] %s118_s17 }
  0x28   : > { %s108_s19 = scalar_lea.sflag [#allocation7], %s107_s10 }
  0x29   : > { %p1251_p8 = pneg %p2328_p3 }
  0x2c   : > { %s2322_s15 = scalar_lea.hbm %s3257_s2, %s1024_s12  ;;  %s1254_s28 = scalar_lea.hbm %s3257_s2, 256 }
  0x2d   : > { %s1249_s20 = scalar_lea.hbm %s2322_s15, 128  ;;  %p1255_p7 = scmp.lt.u32.totalorder %s2322_s15, %s3257_s2 }
  0x2e   : > { %p1250_p6 = scmp.ne.s32.totalorder %s2322_s15, %s1249_s20  ;;  %p1256_p13 = scmp.lt.u32.totalorder %s1254_s28, %s1249_s20 }
  0x2f   : > { %p1258_p1 = scmp.lt.u32.totalorder %s1249_s20, %s2322_s15 }
  0x30   : > { %p1252_p9 = pnand %p1251_p8, %p1250_p6  ;;  %p1257_p2 = por %p1256_p13, %p1255_p7 }
  0x32   : > { %p1253_p10 = pneg %p1252_p9  ;;  %p1259_p4 = por %p1258_p1, %p1257_p2 }
  0x34   : > { %p1260_p5 = pnand %p1259_p4, %p1253_p10 }
  0x36   : > { %1263 = shalt.err (!%p1260_p5)
}
  0x37   : > { %s1264_s5 = scalar_lea.vmem %s2324_s17, 128  ;;  %s2200_s10 = smov [#allocation6]  }
  0x38   : > { %p1265_p6 = scmp.ne.s32.totalorder %s2324_s17, %s1264_s5  ;;  %s1269_s11 = sshll.u32 %s2200_s10, 4  ;;  %s1270_s11 = int_to_ptr.vmem [resolvable:$false] %s1269_s11 }
  0x39   : > { %s1271_s12 = scalar_lea.vmem %s1270_s11, 256  ;;  %p1272_p12 = scmp.lt.s32.totalorder %s2324_s17, %s1270_s11 }
  0x3a   : > { %p1267_p9 = pnand %p1265_p6, %p1251_p8  ;;  %p1273_p7 = scmp.lt.s32.totalorder %s1271_s12, %s1264_s5 }
  0x3c   : > { %p1268_p0 = pneg %p1267_p9  ;;  %p1274_p13 = por %p1273_p7, %p1272_p12 }
  0x3e   : > { %p1275_p1 = pnand %p1274_p13, %p1268_p0 }
  0x40   : > { %1278 = shalt.err (!%p1275_p1)
}
  0x41   : > { %1163 = dma.hbm_to_vmem [thread:$0]  (!%p2328_p3), %s2322_s15, 128, %s2324_s17, %s108_s19  }
  0x42   : > { %p3259_p4 = scmp.lt.s32.totalorder %s2197_s27, 3  ;;  %p3260_p5 = scmp.ge.s32.totalorder %s2197_s27, 1 }
  0x44   : > { %p124_p8 = pnand %p3260_p5, %p3259_p4 }
  0x46   : > { %127 = sbr.rel (%p124_p8) target bundleno = 908 (0x38c), region = 24 }
  0x4d   : > { %s2364_s13 = sand.u32 1, %s2181_s23  }
  0x4e   : > { %3261 = sst [smem:[#allocation90_spill]] %s2364_s13  ;;  %s1026_s14 = sshll.u32 %s2364_s13, 3 }
  0x4f   : > { %s130_s16 = scalar_lea.sflag [#allocation7], %s2364_s13  ;;  %s2368_s20 = scalar_lea.vmem [#allocation6], %s1026_s14 }
  0x50   : > { %3262 = sst [smem:[#allocation91_spill]] %s2368_s20 }
  0x51   : > { %2166 = dma.done.wait (%p2300_p11), %s130_s16, 128  }
  0x52   : > { %2168 = vsyncadd (%p2300_p11), %s130_s16, 4294967168  ;;  %p153_p12 = scmp.lt.s32.totalorder %s2189_s25, 0  ;;  %s154_s17 = ssub.s32 0, %s2189_s25 }
  0x53   : > { %s1028_s18 = smin.u32 %s2189_s25, %s154_s17  ;;  %p1169_p0 = scmp.eq.s32.totalorder %s2189_s25, 0 }
  0x54   : > { %s156_s19 = sand.u32 1, %s1028_s18   ;;  %s165_s0 = sld [smem:[#allocation5]] }
  0x55   : > { %s157_s21 = ssub.s32 0, %s156_s19  ;;  %s2381_s28 = sld [smem:[#allocation5 + $0x1]] }
  0x56   : > { %s3312_s21 = smov (!%p153_p12, %s157_s21), %s156_s19  ;;  %s2201_s6 = smov [#allocation2]  }
  0x57   : > { %3263 = sst [smem:[#allocation92_spill]] %s3312_s21  ;;  %s175_s30 = sshll.u32 %s2201_s6, 4  ;;  %s2383_s30 = int_to_ptr.vmem [resolvable:$true] %s175_s30 }
  0x58   : > { %s2202_s4 = smov [#allocation2 + $0x1]   ;;  %s2387_s10 = sld [smem:[#allocation5 + $0x2]] }
  0x59   : > { %s191_s5 = sshll.u32 %s2202_s4, 4  ;;  %s2203_s17 = smov [#allocation2 + $0x2]   ;;  %s2385_s5 = int_to_ptr.vmem [resolvable:$true] %s191_s5 }
  0x5a   : > { %s1030_s11 = sshll.u32 %s165_s0, 4  ;;  %s207_s18 = sshll.u32 %s2203_s17, 4  ;;  %s2417_s18 = int_to_ptr.vmem [resolvable:$true] %s207_s18 }
  0x5b   : > { %s167_s16 = scalar_lea.hbm %s3204_s1, %s1030_s11  ;;  %s2397_s4 = scalar_lea.hbm %s3204_s1, 1024 }
  0x5c   : > { %s1279_s19 = scalar_lea.hbm %s167_s16, 16  ;;  %p1284_p2 = scmp.lt.u32.totalorder %s167_s16, %s3204_s1 }
  0x5d   : > { %p1280_p11 = scmp.ne.s32.totalorder %s167_s16, %s1279_s19  ;;  %p1285_p6 = scmp.lt.u32.totalorder %s2397_s4, %s1279_s19 }
  0x5e   : > { %p1287_p7 = scmp.lt.u32.totalorder %s1279_s19, %s167_s16 }
  0x5f   : > { %p1281_p3 = pnand %p1280_p11, %p1169_p0  ;;  %p1286_p9 = por %p1285_p6, %p1284_p2 }
  0x61   : > { %p1282_p10 = pneg %p1281_p3  ;;  %p1288_p13 = por %p1287_p7, %p1286_p9 }
  0x63   : > { %p1289_p1 = pnand %p1288_p13, %p1282_p10 }
  0x65   : > { %1292 = shalt.err (!%p1289_p1)  }
  0x66   : > { %s1293_s0 = scalar_lea.vmem %s2383_s30, 16  ;;  %s2408_s15 = scalar_lea.vmem %s2383_s30, 512 }
  0x67   : > { %p1294_p4 = scmp.ne.s32.totalorder %s2383_s30, %s1293_s0  ;;  %p1300_p12 = scmp.lt.s32.totalorder %s2383_s30, %s2383_s30 }
  0x68   : > { %p1301_p11 = scmp.lt.s32.totalorder %s2408_s15, %s1293_s0 }
  0x69   : > { %p1295_p5 = pnand %p1294_p4, %p1169_p0 }
  0x6a   : > { %p1302_p3 = por %p1301_p11, %p1300_p12 }
  0x6b   : > { %p1296_p8 = pneg %p1295_p5 }
  0x6d   : > { %p1303_p2 = pnand %p1302_p3, %p1296_p8 }
  0x6f   : > { %1306 = shalt.err (!%p1303_p2)  }
  0x70   : > { %1142 = dma.hbm_to_vmem [thread:$0]  (%p1169_p0), %s167_s16, 16, %s2383_s30, [#allocation3] }
  0x71   : > { %s1032_s2 = sshll.u32 %s2381_s28, 4  ;;  %s2422_s14 = sld [smem:[#allocation5 + $0x3]] }
  0x72   : > { %s182_s12 = scalar_lea.hbm %s3204_s1, %s1032_s2 }
  0x73   : > { %s1307_s17 = scalar_lea.hbm %s182_s12, 16  ;;  %p1312_p7 = scmp.lt.u32.totalorder %s182_s12, %s3204_s1 }
  0x74   : > { %p1308_p10 = scmp.ne.s32.totalorder %s182_s12, %s1307_s17  ;;  %p1313_p13 = scmp.lt.u32.totalorder %s2397_s4, %s1307_s17 }
  0x75   : > { %p1315_p4 = scmp.lt.u32.totalorder %s1307_s17, %s182_s12 }
  0x76   : > { %p1309_p6 = pnand %p1308_p10, %p1169_p0  ;;  %p1314_p1 = por %p1313_p13, %p1312_p7 }
  0x78   : > { %p1310_p9 = pneg %p1309_p6  ;;  %p1316_p5 = por %p1315_p4, %p1314_p1 }
  0x7a   : > { %p1317_p8 = pnand %p1316_p5, %p1310_p9 }
  0x7c   : > { %1320 = shalt.err (!%p1317_p8)  }
  0x7d   : > { %s1321_s28 = scalar_lea.vmem %s2385_s5, 16  ;;  %p1328_p2 = scmp.lt.s32.totalorder %s2385_s5, %s2383_s30 }
  0x7e   : > { %p1322_p12 = scmp.ne.s32.totalorder %s2385_s5, %s1321_s28  ;;  %p1329_p10 = scmp.lt.s32.totalorder %s2408_s15, %s1321_s28 }
  0x80   : > { %p1323_p11 = pnand %p1322_p12, %p1169_p0  ;;  %p1330_p6 = por %p1329_p10, %p1328_p2 }
  0x82   : > { %p1324_p3 = pneg %p1323_p11 }
  0x84   : > { %p1331_p7 = pnand %p1330_p6, %p1324_p3 }
  0x86   : > { %1334 = shalt.err (!%p1331_p7)  }
  0x87   : > { %1143 = dma.hbm_to_vmem [thread:$0]  (%p1169_p0), %s182_s12, 16, %s2385_s5, [#allocation3] }
  0x88   : > { %s1034_s16 = sshll.u32 %s2387_s10, 4  ;;  %s2204_s11 = smov [#allocation2 + $0x3]  }
  0x89   : > { %s198_s29 = scalar_lea.hbm %s3204_s1, %s1034_s16  ;;  %s223_s17 = sshll.u32 %s2204_s11, 4  ;;  %s224_s17 = int_to_ptr.vmem [resolvable:$true] %s223_s17 }
  0x8a   : > { %s1335_s19 = scalar_lea.hbm %s198_s29, 16  ;;  %p1340_p4 = scmp.lt.u32.totalorder %s198_s29, %s3204_s1 }
  0x8b   : > { %p1336_p9 = scmp.ne.s32.totalorder %s198_s29, %s1335_s19  ;;  %p1341_p5 = scmp.lt.u32.totalorder %s2397_s4, %s1335_s19 }
  0x8c   : > { %p1343_p12 = scmp.lt.u32.totalorder %s1335_s19, %s198_s29 }
  0x8d   : > { %p1337_p13 = pnand %p1336_p9, %p1169_p0  ;;  %p1342_p8 = por %p1341_p5, %p1340_p4 }
  0x8f   : > { %p1338_p1 = pneg %p1337_p13  ;;  %p1344_p11 = por %p1343_p12, %p1342_p8 }
  0x91   : > { %p1345_p3 = pnand %p1344_p11, %p1338_p1 }
  0x93   : > { %1348 = shalt.err (!%p1345_p3)  }
  0x94   : > { %s1349_s5 = scalar_lea.vmem %s2417_s18, 16  ;;  %p1356_p7 = scmp.lt.s32.totalorder %s2417_s18, %s2383_s30 }
  0x95   : > { %p1350_p2 = scmp.ne.s32.totalorder %s2417_s18, %s1349_s5  ;;  %p1357_p9 = scmp.lt.s32.totalorder %s2408_s15, %s1349_s5 }
  0x97   : > { %p1351_p10 = pnand %p1350_p2, %p1169_p0  ;;  %p1358_p13 = por %p1357_p9, %p1356_p7 }
  0x99   : > { %p1352_p6 = pneg %p1351_p10 }
  0x9b   : > { %p1359_p4 = pnand %p1358_p13, %p1352_p6 }
  0x9d   : > { %1362 = shalt.err (!%p1359_p4)  }
  0x9e   : > { %1144 = dma.hbm_to_vmem [thread:$0]  (%p1169_p0), %s198_s29, 16, %s2417_s18, [#allocation3] }
  0x9f   : > { %s2460_s10 = sld [smem:[#allocation5 + $0x4]]  ;;  %s1036_s12 = sshll.u32 %s2422_s14, 4 }
  0xa0   : > { %s214_s2 = scalar_lea.hbm %s3204_s1, %s1036_s12  ;;  %s2205_s11 = smov [#allocation2 + $0x4]  }
  0xa1   : > { %s239_s19 = sshll.u32 %s2205_s11, 4  ;;  %s1363_s6 = scalar_lea.hbm %s214_s2, 16  ;;  %s240_s19 = int_to_ptr.vmem [resolvable:$true] %s239_s19 }
  0xa2   : > { %p1364_p1 = scmp.ne.s32.totalorder %s214_s2, %s1363_s6  ;;  %p1368_p12 = scmp.lt.u32.totalorder %s214_s2, %s3204_s1 }
  0xa3   : > { %p1369_p11 = scmp.lt.u32.totalorder %s2397_s4, %s1363_s6  ;;  %p1371_p2 = scmp.lt.u32.totalorder %s1363_s6, %s214_s2 }
  0xa4   : > { %p1365_p5 = pnand %p1364_p1, %p1169_p0 }
  0xa5   : > { %p1370_p3 = por %p1369_p11, %p1368_p12 }
  0xa6   : > { %p1366_p8 = pneg %p1365_p5 }
  0xa7   : > { %p1372_p10 = por %p1371_p2, %p1370_p3 }
  0xa9   : > { %p1373_p6 = pnand %p1372_p10, %p1366_p8 }
  0xab   : > { %1376 = shalt.err (!%p1373_p6)  }
  0xac   : > { %s1377_s18 = scalar_lea.vmem %s224_s17, 16  ;;  %p1384_p4 = scmp.lt.s32.totalorder %s224_s17, %s2383_s30 }
  0xad   : > { %p1378_p7 = scmp.ne.s32.totalorder %s224_s17, %s1377_s18  ;;  %p1385_p1 = scmp.lt.s32.totalorder %s2408_s15, %s1377_s18 }
  0xaf   : > { %p1379_p9 = pnand %p1378_p7, %p1169_p0  ;;  %p1386_p5 = por %p1385_p1, %p1384_p4 }
  0xb1   : > { %p1380_p13 = pneg %p1379_p9 }
  0xb3   : > { %p1387_p11 = pnand %p1386_p5, %p1380_p13 }
  0xb5   : > { %1390 = shalt.err (!%p1387_p11)  }
  0xb6   : > { %1145 = dma.hbm_to_vmem [thread:$0]  (%p1169_p0), %s214_s2, 16, %s224_s17, [#allocation3] }
  0xb7   : > { %s2478_s14 = sld [smem:[#allocation5 + $0x5]]  ;;  %s2480_s29 = sld [smem:[#allocation5 + $0x6]] }
  0xb8   : > { %s1038_s12 = sshll.u32 %s2460_s10, 4  ;;  %s2206_s16 = smov [#allocation2 + $0x5]  }
  0xb9   : > { %s255_s0 = sshll.u32 %s2206_s16, 4  ;;  %s230_s28 = scalar_lea.hbm %s3204_s1, %s1038_s12  ;;  %s2486_s0 = int_to_ptr.vmem [resolvable:$true] %s255_s0 }
  0xba   : > { %s1391_s5 = scalar_lea.hbm %s230_s28, 16  ;;  %p1396_p2 = scmp.lt.u32.totalorder %s230_s28, %s3204_s1 }
  0xbb   : > { %p1392_p8 = scmp.ne.s32.totalorder %s230_s28, %s1391_s5  ;;  %p1397_p10 = scmp.lt.u32.totalorder %s2397_s4, %s1391_s5 }
  0xbc   : > { %p1399_p7 = scmp.lt.u32.totalorder %s1391_s5, %s230_s28 }
  0xbd   : > { %p1393_p12 = pnand %p1392_p8, %p1169_p0  ;;  %p1398_p6 = por %p1397_p10, %p1396_p2 }
  0xbf   : > { %p1394_p3 = pneg %p1393_p12  ;;  %p1400_p9 = por %p1399_p7, %p1398_p6 }
  0xc1   : > { %p1401_p13 = pnand %p1400_p9, %p1394_p3 }
  0xc3   : > { %1404 = shalt.err (!%p1401_p13)  }
  0xc4   : > { %s1405_s10 = scalar_lea.vmem %s240_s19, 16  ;;  %p1412_p11 = scmp.lt.s32.totalorder %s240_s19, %s2383_s30 }
  0xc5   : > { %p1406_p4 = scmp.ne.s32.totalorder %s240_s19, %s1405_s10  ;;  %p1413_p8 = scmp.lt.s32.totalorder %s2408_s15, %s1405_s10 }
  0xc7   : > { %p1407_p1 = pnand %p1406_p4, %p1169_p0  ;;  %p1414_p12 = por %p1413_p8, %p1412_p11 }
  0xc9   : > { %p1408_p5 = pneg %p1407_p1 }
  0xcb   : > { %p1415_p2 = pnand %p1414_p12, %p1408_p5 }
  0xcd   : > { %1418 = shalt.err (!%p1415_p2)  }
  0xce   : > { %1146 = dma.hbm_to_vmem [thread:$0]  (%p1169_p0), %s230_s28, 16, %s240_s19, [#allocation3] }
  0xcf   : > { %s2500_s18 = sld [smem:[#allocation5 + $0x7]]  ;;  %s1040_s12 = sshll.u32 %s2478_s14, 4 }
  0xd0   : > { %s2207_s16 = smov [#allocation2 + $0x6]   ;;  %s246_s17 = scalar_lea.hbm %s3204_s1, %s1040_s12 }
  0xd1   : > { %s271_s11 = sshll.u32 %s2207_s16, 4  ;;  %s1042_s2 = sshll.u32 %s2480_s29, 4  ;;  %s272_s11 = int_to_ptr.vmem [resolvable:$true] %s271_s11 }
  0xd2   : > { %s1419_s10 = scalar_lea.hbm %s246_s17, 16  ;;  %p1424_p7 = scmp.lt.u32.totalorder %s246_s17, %s3204_s1 }
  0xd3   : > { %p1420_p3 = scmp.ne.s32.totalorder %s246_s17, %s1419_s10  ;;  %p1425_p9 = scmp.lt.u32.totalorder %s2397_s4, %s1419_s10 }
  0xd4   : > { %p1427_p4 = scmp.lt.u32.totalorder %s1419_s10, %s246_s17 }
  0xd5   : > { %p1421_p10 = pnand %p1420_p3, %p1169_p0  ;;  %p1426_p13 = por %p1425_p9, %p1424_p7 }
  0xd7   : > { %p1422_p6 = pneg %p1421_p10  ;;  %p1428_p1 = por %p1427_p4, %p1426_p13 }
  0xd9   : > { %p1429_p5 = pnand %p1428_p1, %p1422_p6 }
  0xdb   : > { %1432 = shalt.err (!%p1429_p5)  }
  0xdc   : > { %s1433_s19 = scalar_lea.vmem %s2486_s0, 16  ;;  %p1440_p2 = scmp.lt.s32.totalorder %s2486_s0, %s2383_s30 }
  0xdd   : > { %p1434_p11 = scmp.ne.s32.totalorder %s2486_s0, %s1433_s19  ;;  %p1441_p3 = scmp.lt.s32.totalorder %s2408_s15, %s1433_s19 }
  0xdf   : > { %p1435_p8 = pnand %p1434_p11, %p1169_p0  ;;  %p1442_p10 = por %p1441_p3, %p1440_p2 }
  0xe1   : > { %p1436_p12 = pneg %p1435_p8 }
  0xe3   : > { %p1443_p7 = pnand %p1442_p10, %p1436_p12 }
  0xe5   : > { %1446 = shalt.err (!%p1443_p7)  }
  0xe6   : > { %1147 = dma.hbm_to_vmem [thread:$0]  (%p1169_p0), %s246_s17, 16, %s2486_s0, [#allocation3] }
  0xe7   : > { %s262_s14 = scalar_lea.hbm %s3204_s1, %s1042_s2 }
  0xe8   : > { %s1447_s29 = scalar_lea.hbm %s262_s14, 16  ;;  %p1452_p4 = scmp.lt.u32.totalorder %s262_s14, %s3204_s1 }
  0xe9   : > { %p1448_p6 = scmp.ne.s32.totalorder %s262_s14, %s1447_s29  ;;  %p1453_p1 = scmp.lt.u32.totalorder %s2397_s4, %s1447_s29 }
  0xea   : > { %p1455_p11 = scmp.lt.u32.totalorder %s1447_s29, %s262_s14 }
  0xeb   : > { %p1449_p9 = pnand %p1448_p6, %p1169_p0  ;;  %p1454_p5 = por %p1453_p1, %p1452_p4 }
  0xed   : > { %p1450_p13 = pneg %p1449_p9  ;;  %p1456_p8 = por %p1455_p11, %p1454_p5 }
  0xef   : > { %p1457_p12 = pnand %p1456_p8, %p1450_p13 }
  0xf1   : > { %1460 = shalt.err (!%p1457_p12)  }
  0xf2   : > { %s1461_s0 = scalar_lea.vmem %s272_s11, 16  ;;  %p1468_p7 = scmp.lt.s32.totalorder %s272_s11, %s2383_s30 }
  0xf3   : > { %p1462_p2 = scmp.ne.s32.totalorder %s272_s11, %s1461_s0  ;;  %p1469_p6 = scmp.lt.s32.totalorder %s2408_s15, %s1461_s0 }
  0xf5   : > { %p1463_p3 = pnand %p1462_p2, %p1169_p0  ;;  %p1470_p9 = por %p1469_p6, %p1468_p7 }
  0xf7   : > { %p1464_p10 = pneg %p1463_p3 }
  0xf9   : > { %p1471_p1 = pnand %p1470_p9, %p1464_p10 }
  0xfb   : > { %1474 = shalt.err (!%p1471_p1)  }
  0xfc   : > { %1148 = dma.hbm_to_vmem [thread:$0]  (%p1169_p0), %s262_s14, 16, %s272_s11, [#allocation3] }
  0xfd   : > { %s1044_s16 = sshll.u32 %s2500_s18, 4  ;;  %s2208_s2 = smov [#allocation2 + $0x7]  }
  0xfe   : > { %s278_s17 = scalar_lea.hbm %s3204_s1, %s1044_s16  ;;  %s287_s10 = sshll.u32 %s2208_s2, 4  ;;  %s288_s10 = int_to_ptr.vmem [resolvable:$true] %s287_s10 }
  0xff   : > { %s2542_s19 = sld [smem:[#allocation5 + $0x80]]  ;;  %s1475_s26 = scalar_lea.hbm %s278_s17, 16 }
 0x100   : > { %p1476_p13 = scmp.ne.s32.totalorder %s278_s17, %s1475_s26  ;;  %p1480_p11 = scmp.lt.u32.totalorder %s278_s17, %s3204_s1 }
 0x101   : > { %p1481_p8 = scmp.lt.u32.totalorder %s2397_s4, %s1475_s26  ;;  %p1483_p2 = scmp.lt.u32.totalorder %s1475_s26, %s278_s17 }
 0x102   : > { %p1477_p4 = pnand %p1476_p13, %p1169_p0 }
 0x103   : > { %p1482_p12 = por %p1481_p8, %p1480_p11 }
 0x104   : > { %p1478_p5 = pneg %p1477_p4 }
 0x105   : > { %p1484_p3 = por %p1483_p2, %p1482_p12 }
 0x107   : > { %p1485_p10 = pnand %p1484_p3, %p1478_p5 }
 0x109   : > { %1488 = shalt.err (!%p1485_p10)  }
 0x10a   : > { %s1489_s18 = scalar_lea.vmem %s288_s10, 16  ;;  %p1496_p1 = scmp.lt.s32.totalorder %s288_s10, %s2383_s30 }
 0x10b   : > { %p1490_p7 = scmp.ne.s32.totalorder %s288_s10, %s1489_s18  ;;  %p1497_p13 = scmp.lt.s32.totalorder %s2408_s15, %s1489_s18 }
 0x10d   : > { %p1491_p6 = pnand %p1490_p7, %p1169_p0  ;;  %p1498_p4 = por %p1497_p13, %p1496_p1 }
 0x10f   : > { %p1492_p9 = pneg %p1491_p6 }
 0x111   : > { %p1499_p8 = pnand %p1498_p4, %p1492_p9 }
 0x113   : > { %1502 = shalt.err (!%p1499_p8)  }
 0x114   : > { %1149 = dma.hbm_to_vmem [thread:$0]  (%p1169_p0), %s278_s17, 16, %s288_s10, [#allocation3] }
 0x115   : > { %s2556_s11 = sld [smem:[#allocation5 + $0x81]]  ;;  %s2209_s14 = smov [#allocation2 + $0x8]  }
 0x116   : > { %s304_s28 = sshll.u32 %s2209_s14, 4  ;;  %s2210_s12 = smov [#allocation2 + $0x9]   ;;  %s2558_s28 = int_to_ptr.vmem [resolvable:$true] %s304_s28 }
 0x117   : > { %s320_s0 = sshll.u32 %s2210_s12, 4  ;;  %s2562_s16 = sld [smem:[#allocation5 + $0x82]]  ;;  %s2560_s0 = int_to_ptr.vmem [resolvable:$true] %s320_s0 }
 0x118   : > { %s1046_s6 = sshll.u32 %s2542_s19, 4  ;;  %s2211_s8 = smov [#allocation2 + $0xa]  }
 0x119   : > { %s295_s26 = scalar_lea.hbm %s3204_s1, %s1046_s6  ;;  %s336_s17 = sshll.u32 %s2211_s8, 4  ;;  %s2585_s17 = int_to_ptr.vmem [resolvable:$true] %s336_s17 }
 0x11a   : > { %s1503_s10 = scalar_lea.hbm %s295_s26, 16  ;;  %p1508_p2 = scmp.lt.u32.totalorder %s295_s26, %s3204_s1 }
 0x11b   : > { %p1504_p5 = scmp.ne.s32.totalorder %s295_s26, %s1503_s10  ;;  %p1509_p3 = scmp.lt.u32.totalorder %s2397_s4, %s1503_s10 }
 0x11c   : > { %p1511_p7 = scmp.lt.u32.totalorder %s1503_s10, %s295_s26 }
 0x11d   : > { %p1505_p11 = pnand %p1504_p5, %p1169_p0  ;;  %p1510_p10 = por %p1509_p3, %p1508_p2 }
 0x11f   : > { %p1506_p12 = pneg %p1505_p11  ;;  %p1512_p6 = por %p1511_p7, %p1510_p10 }
 0x121   : > { %p1513_p9 = pnand %p1512_p6, %p1506_p12 }
 0x123   : > { %1516 = shalt.err (!%p1513_p9)  }
 0x124   : > { %s1517_s19 = scalar_lea.vmem %s2558_s28, 16  ;;  %p1524_p8 = scmp.lt.s32.totalorder %s2558_s28, %s2383_s30 }
 0x125   : > { %p1518_p1 = scmp.ne.s32.totalorder %s2558_s28, %s1517_s19  ;;  %p1525_p5 = scmp.lt.s32.totalorder %s2408_s15, %s1517_s19 }
 0x127   : > { %p1519_p13 = pnand %p1518_p1, %p1169_p0  ;;  %p1526_p11 = por %p1525_p5, %p1524_p8 }
 0x129   : > { %p1520_p4 = pneg %p1519_p13 }
 0x12b   : > { %p1527_p2 = pnand %p1526_p11, %p1520_p4 }
 0x12d   : > { %1530 = shalt.err (!%p1527_p2)  }
 0x12e   : > { %1150 = dma.hbm_to_vmem [thread:$0]  (%p1169_p0), %s295_s26, 16, %s2558_s28, [#allocation3] }
 0x12f   : > { %s1048_s14 = sshll.u32 %s2556_s11, 4  ;;  %s2590_s2 = sld [smem:[#allocation5 + $0x83]] }
 0x130   : > { %s311_s5 = scalar_lea.hbm %s3204_s1, %s1048_s14 }
 0x131   : > { %s1531_s8 = scalar_lea.hbm %s311_s5, 16  ;;  %p1536_p7 = scmp.lt.u32.totalorder %s311_s5, %s3204_s1 }
 0x132   : > { %p1532_p12 = scmp.ne.s32.totalorder %s311_s5, %s1531_s8  ;;  %p1537_p6 = scmp.lt.u32.totalorder %s2397_s4, %s1531_s8 }
 0x133   : > { %p1539_p1 = scmp.lt.u32.totalorder %s1531_s8, %s311_s5 }
 0x134   : > { %p1533_p3 = pnand %p1532_p12, %p1169_p0  ;;  %p1538_p9 = por %p1537_p6, %p1536_p7 }
 0x136   : > { %p1534_p10 = pneg %p1533_p3  ;;  %p1540_p13 = por %p1539_p1, %p1538_p9 }
 0x138   : > { %p1541_p4 = pnand %p1540_p13, %p1534_p10 }
 0x13a   : > { %1544 = shalt.err (!%p1541_p4)  }
 0x13b   : > { %s1545_s11 = scalar_lea.vmem %s2560_s0, 16  ;;  %p1552_p2 = scmp.lt.s32.totalorder %s2560_s0, %s2383_s30 }
 0x13c   : > { %p1546_p8 = scmp.ne.s32.totalorder %s2560_s0, %s1545_s11  ;;  %p1553_p12 = scmp.lt.s32.totalorder %s2408_s15, %s1545_s11 }
 0x13e   : > { %p1547_p5 = pnand %p1546_p8, %p1169_p0  ;;  %p1554_p3 = por %p1553_p12, %p1552_p2 }
 0x140   : > { %p1548_p11 = pneg %p1547_p5 }
 0x142   : > { %p1555_p6 = pnand %p1554_p3, %p1548_p11 }
 0x144   : > { %1558 = shalt.err (!%p1555_p6)  }
 0x145   : > { %1151 = dma.hbm_to_vmem [thread:$0]  (%p1169_p0), %s311_s5, 16, %s2560_s0, [#allocation3] }
 0x146   : > { %s1050_s28 = sshll.u32 %s2562_s16, 4  ;;  %s2212_s14 = smov [#allocation2 + $0xb]  }
 0x147   : > { %s327_s19 = scalar_lea.hbm %s3204_s1, %s1050_s28  ;;  %s352_s12 = sshll.u32 %s2212_s14, 4  ;;  %s353_s12 = int_to_ptr.vmem [resolvable:$true] %s352_s12 }
 0x148   : > { %s1559_s6 = scalar_lea.hbm %s327_s19, 16  ;;  %p1564_p1 = scmp.lt.u32.totalorder %s327_s19, %s3204_s1 }
 0x149   : > { %p1560_p10 = scmp.ne.s32.totalorder %s327_s19, %s1559_s6  ;;  %p1565_p13 = scmp.lt.u32.totalorder %s2397_s4, %s1559_s6 }
 0x14a   : > { %p1567_p8 = scmp.lt.u32.totalorder %s1559_s6, %s327_s19 }
 0x14b   : > { %p1561_p7 = pnand %p1560_p10, %p1169_p0  ;;  %p1566_p4 = por %p1565_p13, %p1564_p1 }
 0x14d   : > { %p1562_p9 = pneg %p1561_p7  ;;  %p1568_p5 = por %p1567_p8, %p1566_p4 }
 0x14f   : > { %p1569_p11 = pnand %p1568_p5, %p1562_p9 }
 0x151   : > { %1572 = shalt.err (!%p1569_p11)  }
 0x152   : > { %s1573_s0 = scalar_lea.vmem %s2585_s17, 16  ;;  %p1580_p6 = scmp.lt.s32.totalorder %s2585_s17, %s2383_s30 }
 0x153   : > { %p1574_p2 = scmp.ne.s32.totalorder %s2585_s17, %s1573_s0  ;;  %p1581_p10 = scmp.lt.s32.totalorder %s2408_s15, %s1573_s0 }
 0x155   : > { %p1575_p12 = pnand %p1574_p2, %p1169_p0  ;;  %p1582_p7 = por %p1581_p10, %p1580_p6 }
 0x157   : > { %p1576_p3 = pneg %p1575_p12 }
 0x159   : > { %p1583_p1 = pnand %p1582_p7, %p1576_p3 }
 0x15b   : > { %1586 = shalt.err (!%p1583_p1)  }
 0x15c   : > { %1152 = dma.hbm_to_vmem [thread:$0]  (%p1169_p0), %s327_s19, 16, %s2585_s17, [#allocation3] }
 0x15d   : > { %s2628_s16 = sld [smem:[#allocation5 + $0x84]]  ;;  %s1052_s5 = sshll.u32 %s2590_s2, 4 }
 0x15e   : > { %s343_s28 = scalar_lea.hbm %s3204_s1, %s1052_s5  ;;  %s2213_s26 = smov [#allocation2 + $0xc]  }
 0x15f   : > { %s368_s18 = sshll.u32 %s2213_s26, 4  ;;  %s1587_s14 = scalar_lea.hbm %s343_s28, 16  ;;  %s369_s18 = int_to_ptr.vmem [resolvable:$true] %s368_s18 }
 0x160   : > { %p1588_p9 = scmp.ne.s32.totalorder %s343_s28, %s1587_s14  ;;  %p1592_p8 = scmp.lt.u32.totalorder %s343_s28, %s3204_s1 }
 0x161   : > { %p1593_p5 = scmp.lt.u32.totalorder %s2397_s4, %s1587_s14  ;;  %p1595_p2 = scmp.lt.u32.totalorder %s1587_s14, %s343_s28 }
 0x162   : > { %p1589_p13 = pnand %p1588_p9, %p1169_p0 }
 0x163   : > { %p1594_p11 = por %p1593_p5, %p1592_p8 }
 0x164   : > { %p1590_p4 = pneg %p1589_p13 }
 0x165   : > { %p1596_p12 = por %p1595_p2, %p1594_p11 }
 0x167   : > { %p1597_p3 = pnand %p1596_p12, %p1590_p4 }
 0x169   : > { %1600 = shalt.err (!%p1597_p3)  }
 0x16a   : > { %s1601_s17 = scalar_lea.vmem %s353_s12, 16  ;;  %p1608_p1 = scmp.lt.s32.totalorder %s353_s12, %s2383_s30 }
 0x16b   : > { %p1602_p6 = scmp.ne.s32.totalorder %s353_s12, %s1601_s17  ;;  %p1609_p9 = scmp.lt.s32.totalorder %s2408_s15, %s1601_s17 }
 0x16d   : > { %p1603_p10 = pnand %p1602_p6, %p1169_p0  ;;  %p1610_p13 = por %p1609_p9, %p1608_p1 }
 0x16f   : > { %p1604_p7 = pneg %p1603_p10 }
 0x171   : > { %p1611_p5 = pnand %p1610_p13, %p1604_p7 }
 0x173   : > { %1614 = shalt.err (!%p1611_p5)  }
 0x174   : > { %1153 = dma.hbm_to_vmem [thread:$0]  (%p1169_p0), %s343_s28, 16, %s353_s12, [#allocation3] }
 0x175   : > { %s2646_s2 = sld [smem:[#allocation5 + $0x85]]  ;;  %s2648_s19 = sld [smem:[#allocation5 + $0x86]] }
 0x176   : > { %s1054_s10 = sshll.u32 %s2628_s16, 4  ;;  %s2214_s0 = smov [#allocation2 + $0xd]  }
 0x177   : > { %s384_s5 = sshll.u32 %s2214_s0, 4  ;;  %s359_s26 = scalar_lea.hbm %s3204_s1, %s1054_s10  ;;  %s2654_s5 = int_to_ptr.vmem [resolvable:$true] %s384_s5 }
 0x178   : > { %s1615_s14 = scalar_lea.hbm %s359_s26, 16  ;;  %p1620_p2 = scmp.lt.u32.totalorder %s359_s26, %s3204_s1 }
 0x179   : > { %p1616_p4 = scmp.ne.s32.totalorder %s359_s26, %s1615_s14  ;;  %p1621_p12 = scmp.lt.u32.totalorder %s2397_s4, %s1615_s14 }
 0x17a   : > { %p1623_p6 = scmp.lt.u32.totalorder %s1615_s14, %s359_s26 }
 0x17b   : > { %p1617_p8 = pnand %p1616_p4, %p1169_p0  ;;  %p1622_p3 = por %p1621_p12, %p1620_p2 }
 0x17d   : > { %p1618_p11 = pneg %p1617_p8  ;;  %p1624_p10 = por %p1623_p6, %p1622_p3 }
 0x17f   : > { %p1625_p7 = pnand %p1624_p10, %p1618_p11 }
 0x181   : > { %1628 = shalt.err (!%p1625_p7)  }
 0x182   : > { %s1629_s16 = scalar_lea.vmem %s369_s18, 16  ;;  %p1636_p5 = scmp.lt.s32.totalorder %s369_s18, %s2383_s30 }
 0x183   : > { %p1630_p1 = scmp.ne.s32.totalorder %s369_s18, %s1629_s16  ;;  %p1637_p4 = scmp.lt.s32.totalorder %s2408_s15, %s1629_s16 }
 0x185   : > { %p1631_p9 = pnand %p1630_p1, %p1169_p0  ;;  %p1638_p8 = por %p1637_p4, %p1636_p5 }
 0x187   : > { %p1632_p13 = pneg %p1631_p9 }
 0x189   : > { %p1639_p2 = pnand %p1638_p8, %p1632_p13 }
 0x18b   : > { %1642 = shalt.err (!%p1639_p2)  }
 0x18c   : > { %1154 = dma.hbm_to_vmem [thread:$0]  (%p1169_p0), %s359_s26, 16, %s369_s18, [#allocation3] }
 0x18d   : > { %s2668_s6 = sld [smem:[#allocation5 + $0x87]]  ;;  %s1056_s8 = sshll.u32 %s2646_s2, 4 }
 0x18e   : > { %s2215_s17 = smov [#allocation2 + $0xe]   ;;  %s375_s11 = scalar_lea.hbm %s3204_s1, %s1056_s8 }
 0x18f   : > { %s400_s10 = sshll.u32 %s2215_s17, 4  ;;  %s1058_s14 = sshll.u32 %s2648_s19, 4  ;;  %s401_s10 = int_to_ptr.vmem [resolvable:$true] %s400_s10 }
 0x190   : > { %s1643_s12 = scalar_lea.hbm %s375_s11, 16  ;;  %p1648_p6 = scmp.lt.u32.totalorder %s375_s11, %s3204_s1 }
 0x191   : > { %p1644_p11 = scmp.ne.s32.totalorder %s375_s11, %s1643_s12  ;;  %p1649_p10 = scmp.lt.u32.totalorder %s2397_s4, %s1643_s12 }
 0x192   : > { %p1651_p1 = scmp.lt.u32.totalorder %s1643_s12, %s375_s11 }
 0x193   : > { %p1645_p12 = pnand %p1644_p11, %p1169_p0  ;;  %p1650_p7 = por %p1649_p10, %p1648_p6 }
 0x195   : > { %p1646_p3 = pneg %p1645_p12  ;;  %p1652_p9 = por %p1651_p1, %p1650_p7 }
 0x197   : > { %p1653_p13 = pnand %p1652_p9, %p1646_p3 }
 0x199   : > { %1656 = shalt.err (!%p1653_p13)  }
 0x19a   : > { %s1657_s18 = scalar_lea.vmem %s2654_s5, 16  ;;  %p1664_p2 = scmp.lt.s32.totalorder %s2654_s5, %s2383_s30 }
 0x19b   : > { %p1658_p5 = scmp.ne.s32.totalorder %s2654_s5, %s1657_s18  ;;  %p1665_p11 = scmp.lt.s32.totalorder %s2408_s15, %s1657_s18 }
 0x19d   : > { %p1659_p4 = pnand %p1658_p5, %p1169_p0  ;;  %p1666_p12 = por %p1665_p11, %p1664_p2 }
 0x19f   : > { %p1660_p8 = pneg %p1659_p4 }
 0x1a1   : > { %p1667_p6 = pnand %p1666_p12, %p1660_p8 }
 0x1a3   : > { %1670 = shalt.err (!%p1667_p6)  }
 0x1a4   : > { %1155 = dma.hbm_to_vmem [thread:$0]  (%p1169_p0), %s375_s11, 16, %s2654_s5, [#allocation3] }
 0x1a5   : > { %s391_s26 = scalar_lea.hbm %s3204_s1, %s1058_s14 }
 0x1a6   : > { %s1671_s8 = scalar_lea.hbm %s391_s26, 16  ;;  %p1676_p1 = scmp.lt.u32.totalorder %s391_s26, %s3204_s1 }
 0x1a7   : > { %p1672_p3 = scmp.ne.s32.totalorder %s391_s26, %s1671_s8  ;;  %p1677_p9 = scmp.lt.u32.totalorder %s2397_s4, %s1671_s8 }
 0x1a8   : > { %p1679_p5 = scmp.lt.u32.totalorder %s1671_s8, %s391_s26 }
 0x1a9   : > { %p1673_p10 = pnand %p1672_p3, %p1169_p0  ;;  %p1678_p13 = por %p1677_p9, %p1676_p1 }
 0x1ab   : > { %p1674_p7 = pneg %p1673_p10  ;;  %p1680_p4 = por %p1679_p5, %p1678_p13 }
 0x1ad   : > { %p1681_p8 = pnand %p1680_p4, %p1674_p7 }
 0x1af   : > { %1684 = shalt.err (!%p1681_p8)  }
 0x1b0   : > { %s1685_s5 = scalar_lea.vmem %s401_s10, 16  ;;  %p1692_p6 = scmp.lt.s32.totalorder %s401_s10, %s2383_s30 }
 0x1b1   : > { %p1686_p2 = scmp.ne.s32.totalorder %s401_s10, %s1685_s5  ;;  %p1693_p3 = scmp.lt.s32.totalorder %s2408_s15, %s1685_s5 }
 0x1b3   : > { %p1687_p11 = pnand %p1686_p2, %p1169_p0  ;;  %p1694_p10 = por %p1693_p3, %p1692_p6 }
 0x1b5   : > { %p1688_p12 = pneg %p1687_p11 }
 0x1b7   : > { %p1695_p1 = pnand %p1694_p10, %p1688_p12 }
 0x1b9   : > { %1698 = shalt.err (!%p1695_p1)  }
 0x1ba   : > { %1156 = dma.hbm_to_vmem [thread:$0]  (%p1169_p0), %s391_s26, 16, %s401_s10, [#allocation3] }
 0x1bb   : > { %s1060_s29 = sshll.u32 %s2668_s6, 4  ;;  %s2216_s28 = smov [#allocation2 + $0xf]  }
 0x1bc   : > { %s407_s12 = scalar_lea.hbm %s3204_s1, %s1060_s29  ;;  %s416_s16 = sshll.u32 %s2216_s28, 4  ;;  %s417_s16 = int_to_ptr.vmem [resolvable:$true] %s416_s16 }
 0x1bd   : > { %s420_s18 = sadd.s32 1, %s2189_s25  ;;  %s1699_s2 = scalar_lea.hbm %s407_s12, 16 }
 0x1be   : > { %p1700_p7 = scmp.ne.s32.totalorder %s407_s12, %s1699_s2  ;;  %p1704_p5 = scmp.lt.u32.totalorder %s407_s12, %s3204_s1 }
 0x1bf   : > { %p1705_p4 = scmp.lt.u32.totalorder %s2397_s4, %s1699_s2  ;;  %p1707_p2 = scmp.lt.u32.totalorder %s1699_s2, %s407_s12 }
 0x1c0   : > { %p1701_p9 = pnand %p1700_p7, %p1169_p0 }
 0x1c1   : > { %p1706_p8 = por %p1705_p4, %p1704_p5 }
 0x1c2   : > { %p1702_p13 = pneg %p1701_p9 }
 0x1c3   : > { %p1708_p11 = por %p1707_p2, %p1706_p8 }
 0x1c5   : > { %p1709_p12 = pnand %p1708_p11, %p1702_p13 }
 0x1c7   : > { %1712 = shalt.err (!%p1709_p12)  }
 0x1c8   : > { %s1713_s6 = scalar_lea.vmem %s417_s16, 16  ;;  %p1720_p1 = scmp.lt.s32.totalorder %s417_s16, %s2383_s30 }
 0x1c9   : > { %p1714_p6 = scmp.ne.s32.totalorder %s417_s16, %s1713_s6  ;;  %p1721_p7 = scmp.lt.s32.totalorder %s2408_s15, %s1713_s6 }
 0x1cb   : > { %p1715_p3 = pnand %p1714_p6, %p1169_p0  ;;  %p1722_p9 = por %p1721_p7, %p1720_p1 }
 0x1cd   : > { %p1716_p10 = pneg %p1715_p3 }
 0x1cf   : > { %p1723_p4 = pnand %p1722_p9, %p1716_p10 }
 0x1d1   : > { %1726 = shalt.err (!%p1723_p4)  }
 0x1d2   : > { %1157 = dma.hbm_to_vmem [thread:$0]  (%p1169_p0), %s407_s12, 16, %s417_s16, [#allocation3] }
 0x1d3   : > { %s3264_s10 = sshll.u32 %s2364_s13, 4  ;;  %p1061_p13 = scmp.ge.s32.totalorder %s420_s18, 2 }
 0x1d4   : > { %s2725_s26 = scalar_lea.vmem [#allocation9], %s3264_s10 }
 0x1d5   : > { %3265 = sst [smem:[#allocation93_spill]] %s2725_s26  ;;  %424 = sbr.rel (%p1061_p13) target bundleno = 868 (0x364), region = 100 }
 0x1dc   : > { %s425_s17 = ssub.s32 1, %s3312_s21  ;;  %s1121_s0 = sshll.u32 %s2189_s25, 3 }
 0x1dd   : > { %s2729_s5 = sadd.s32 8, %s1121_s0  ;;  %s1064_s29 = sshll.u32 %s425_s17, 4 }
 0x1de   : > { %s428_s11 = sshra.s32 %s2729_s5, 7  ;;  %s3210_s14 = sand.u32 127, %s2729_s5 }
 0x1df   : > { %s2733_s28 = sshll.u32 %s428_s11, 7  ;;  %s2738_s18 = scalar_lea.vmem [#allocation2], %s1064_s29 }
 0x1e0   : > { %s434_s12 = sadd.s32 %s2733_s28, %s3210_s14  ;;  %s448_s2 = sshll.u32 %s2738_s18, 4  ;;  %s2741_s2 = int_to_ptr.vmem [resolvable:$true] %s448_s2 }
 0x1e1   : > { %s435_s16 = sld [smem:[#allocation5 + %s434_s12]]  ;;  %s452_s8 = sadd.s32 1, %s2729_s5 }
 0x1e2   : > { %s900_s6 = scalar_lea.vmem %s2738_s18, 1 [#allocation2]  ;;  %s2746_s10 = sshra.s32 %s452_s8, 7 }
 0x1e3   : > { %s2748_s0 = sand.u32 127, %s452_s8  ;;  %s3220_s11 = sshll.u32 %s2746_s10, 7 }
 0x1e4   : > { %s472_s12 = sshll.u32 %s900_s6, 4  ;;  %s459_s29 = sadd.s32 %s3220_s11, %s2748_s0  ;;  %s2754_s12 = int_to_ptr.vmem [resolvable:$true] %s472_s12 }
 0x1e5   : > { %s2756_s24 = sld [smem:[#allocation5 + %s459_s29]]  ;;  %s476_s9 = sadd.s32 2, %s2729_s5 }
 0x1e6   : > { %s2762_s22 = scalar_lea.sflag [#allocation3], %s425_s17 }
 0x1e7   : > { %s1065_s14 = sshll.u32 %s435_s16, 4 }
 0x1e8   : > { %s438_s27 = scalar_lea.hbm %s3204_s1, %s1065_s14 }
 0x1e9   : > { %s1727_s3 = scalar_lea.hbm %s438_s27, 16  ;;  %p1730_p5 = scmp.lt.u32.totalorder %s438_s27, %s3204_s1 }
 0x1ea   : > { %p1728_p0 = scmp.ne.s32.totalorder %s438_s27, %s1727_s3  ;;  %p1731_p8 = scmp.lt.u32.totalorder %s2397_s4, %s1727_s3 }
 0x1eb   : > { %p1733_p11 = scmp.lt.u32.totalorder %s1727_s3, %s438_s27 }
 0x1ec   : > { %p1732_p2 = por %p1731_p8, %p1730_p5 }
 0x1ee   : > { %p1734_p12 = por %p1733_p11, %p1732_p2 }
 0x1f0   : > { %p1735_p6 = pnand %p1734_p12, %p1728_p0 }
 0x1f2   : > { %1738 = shalt.err (!%p1735_p6)  }
 0x1f3   : > { %s1739_s23 = scalar_lea.vmem %s2741_s2, 16  ;;  %p1744_p10 = scmp.lt.s32.totalorder %s2741_s2, %s2383_s30 }
 0x1f4   : > { %p1740_p3 = scmp.ne.s32.totalorder %s2741_s2, %s1739_s23  ;;  %p1745_p1 = scmp.lt.s32.totalorder %s2408_s15, %s1739_s23 }
 0x1f6   : > { %p1746_p7 = por %p1745_p1, %p1744_p10 }
 0x1f8   : > { %p1747_p9 = pnand %p1746_p7, %p1740_p3 }
 0x1fa   : > { %1750 = shalt.err (!%p1747_p9)  }
 0x1fb   : > { %451 = dma.hbm_to_vmem [thread:$0]  %s438_s27, 16, %s2741_s2, %s2762_s22 }
 0x1fc   : > { %s2775_s3 = sshra.s32 %s476_s9, 7  ;;  %s2777_s7 = sand.u32 127, %s476_s9 }
 0x1fd   : > { %s3221_s17 = sshll.u32 %s2775_s3, 7  ;;  %s905_s14 = scalar_lea.vmem %s2738_s18, 2 [#allocation2] }
 0x1fe   : > { %s483_s16 = sadd.s32 %s3221_s17, %s2777_s7  ;;  %s496_s19 = sshll.u32 %s905_s14, 4  ;;  %s2790_s19 = int_to_ptr.vmem [resolvable:$true] %s496_s19 }
 0x1ff   : > { %s1067_s6 = sshll.u32 %s2756_s24, 4  ;;  %s2785_s29 = sld [smem:[#allocation5 + %s483_s16]] }
 0x200   : > { %s463_s11 = scalar_lea.hbm %s3204_s1, %s1067_s6 }
 0x201   : > { %s1751_s27 = scalar_lea.hbm %s463_s11, 16  ;;  %p1754_p13 = scmp.lt.u32.totalorder %s463_s11, %s3204_s1 }
 0x202   : > { %p1752_p4 = scmp.ne.s32.totalorder %s463_s11, %s1751_s27  ;;  %p1755_p0 = scmp.lt.u32.totalorder %s2397_s4, %s1751_s27 }
 0x203   : > { %p1757_p8 = scmp.lt.u32.totalorder %s1751_s27, %s463_s11 }
 0x204   : > { %p1756_p5 = por %p1755_p0, %p1754_p13 }
 0x206   : > { %p1758_p2 = por %p1757_p8, %p1756_p5 }
 0x208   : > { %p1759_p11 = pnand %p1758_p2, %p1752_p4 }
 0x20a   : > { %1762 = shalt.err (!%p1759_p11)  }
 0x20b   : > { %s1763_s24 = scalar_lea.vmem %s2754_s12, 16  ;;  %p1768_p6 = scmp.lt.s32.totalorder %s2754_s12, %s2383_s30 }
 0x20c   : > { %p1764_p12 = scmp.ne.s32.totalorder %s2754_s12, %s1763_s24  ;;  %p1769_p3 = scmp.lt.s32.totalorder %s2408_s15, %s1763_s24 }
 0x20e   : > { %p1770_p10 = por %p1769_p3, %p1768_p6 }
 0x210   : > { %p1771_p1 = pnand %p1770_p10, %p1764_p12 }
 0x212   : > { %1774 = shalt.err (!%p1771_p1)  }
 0x213   : > { %475 = dma.hbm_to_vmem [thread:$0]  %s463_s11, 16, %s2754_s12, %s2762_s22 }
 0x214   : > { %s500_s14 = sadd.s32 3, %s2729_s5  ;;  %s910_s16 = scalar_lea.vmem %s2738_s18, 3 [#allocation2] }
 0x215   : > { %s2805_s6 = sshra.s32 %s500_s14, 7  ;;  %s2807_s8 = sand.u32 127, %s500_s14 }
 0x216   : > { %s3225_s23 = sshll.u32 %s2805_s6, 7  ;;  %s520_s27 = sshll.u32 %s910_s16, 4  ;;  %s2830_s27 = int_to_ptr.vmem [resolvable:$true] %s520_s27 }
 0x217   : > { %s1070_s2 = sshll.u32 %s2785_s29, 4  ;;  %s507_s9 = sadd.s32 %s3225_s23, %s2807_s8 }
 0x218   : > { %s487_s13 = scalar_lea.hbm %s3204_s1, %s1070_s2  ;;  %s2817_s20 = sld [smem:[#allocation5 + %s507_s9]] }
 0x219   : > { %s1775_s11 = scalar_lea.hbm %s487_s13, 16  ;;  %p1778_p9 = scmp.lt.u32.totalorder %s487_s13, %s3204_s1 }
 0x21a   : > { %p1776_p7 = scmp.ne.s32.totalorder %s487_s13, %s1775_s11  ;;  %p1779_p4 = scmp.lt.u32.totalorder %s2397_s4, %s1775_s11 }
 0x21b   : > { %p1781_p0 = scmp.lt.u32.totalorder %s1775_s11, %s487_s13 }
 0x21c   : > { %p1780_p13 = por %p1779_p4, %p1778_p9 }
 0x21e   : > { %p1782_p5 = por %p1781_p0, %p1780_p13 }
 0x220   : > { %p1783_p8 = pnand %p1782_p5, %p1776_p7 }
 0x222   : > { %1786 = shalt.err (!%p1783_p8)  }
 0x223   : > { %s1787_s17 = scalar_lea.vmem %s2790_s19, 16  ;;  %p1792_p11 = scmp.lt.s32.totalorder %s2790_s19, %s2383_s30 }
 0x224   : > { %p1788_p2 = scmp.ne.s32.totalorder %s2790_s19, %s1787_s17  ;;  %p1793_p12 = scmp.lt.s32.totalorder %s2408_s15, %s1787_s17 }
 0x226   : > { %p1794_p6 = por %p1793_p12, %p1792_p11 }
 0x228   : > { %p1795_p3 = pnand %p1794_p6, %p1788_p2 }
 0x22a   : > { %1798 = shalt.err (!%p1795_p3)  }
 0x22b   : > { %499 = dma.hbm_to_vmem [thread:$0]  %s487_s13, 16, %s2790_s19, %s2762_s22 }
 0x22c   : > { %s524_s26 = sadd.s32 4, %s2729_s5  ;;  %s915_s2 = scalar_lea.vmem %s2738_s18, 4 [#allocation2] }
 0x22d   : > { %s2833_s29 = sshra.s32 %s524_s26, 7  ;;  %s2835_s14 = sand.u32 127, %s524_s26 }
 0x22e   : > { %3266 = sst [smem:[#allocation94_spill]] %s2833_s29  ;;  %s3227_s16 = sshll.u32 %s2833_s29, 7 }
 0x22f   : > { %3267 = sst [smem:[#allocation95_spill]] %s2835_s14  ;;  %s531_s9 = sadd.s32 %s3227_s16, %s2835_s14 }
 0x230   : > { %s544_s24 = sshll.u32 %s915_s2, 4  ;;  %s1073_s11 = sshll.u32 %s2817_s20, 4  ;;  %s2848_s24 = int_to_ptr.vmem [resolvable:$true] %s544_s24 }
 0x231   : > { %s2843_s12 = sld [smem:[#allocation5 + %s531_s9]]  ;;  %s511_s17 = scalar_lea.hbm %s3204_s1, %s1073_s11 }
 0x232   : > { %s1799_s23 = scalar_lea.hbm %s511_s17, 16  ;;  %p1802_p1 = scmp.lt.u32.totalorder %s511_s17, %s3204_s1 }
 0x233   : > { %p1800_p10 = scmp.ne.s32.totalorder %s511_s17, %s1799_s23  ;;  %p1803_p7 = scmp.lt.u32.totalorder %s2397_s4, %s1799_s23 }
 0x234   : > { %p1805_p4 = scmp.lt.u32.totalorder %s1799_s23, %s511_s17 }
 0x235   : > { %p1804_p9 = por %p1803_p7, %p1802_p1 }
 0x237   : > { %p1806_p13 = por %p1805_p4, %p1804_p9 }
 0x239   : > { %p1807_p0 = pnand %p1806_p13, %p1800_p10 }
 0x23b   : > { %1810 = shalt.err (!%p1807_p0)  }
 0x23c   : > { %s1811_s20 = scalar_lea.vmem %s2830_s27, 16  ;;  %p1816_p8 = scmp.lt.s32.totalorder %s2830_s27, %s2383_s30 }
 0x23d   : > { %p1812_p5 = scmp.ne.s32.totalorder %s2830_s27, %s1811_s20  ;;  %p1817_p2 = scmp.lt.s32.totalorder %s2408_s15, %s1811_s20 }
 0x23f   : > { %p1818_p11 = por %p1817_p2, %p1816_p8 }
 0x241   : > { %p1819_p12 = pnand %p1818_p11, %p1812_p5 }
 0x243   : > { %1822 = shalt.err (!%p1819_p12)  }
 0x244   : > { %523 = dma.hbm_to_vmem [thread:$0]  %s511_s17, 16, %s2830_s27, %s2762_s22 }
 0x245   : > { %s548_s25 = sadd.s32 5, %s2729_s5  ;;  %s920_s23 = scalar_lea.vmem %s2738_s18, 5 [#allocation2] }
 0x246   : > { %s2863_s2 = sshra.s32 %s548_s25, 7  ;;  %s2865_s9 = sand.u32 127, %s548_s25 }
 0x247   : > { %3268 = sst [smem:[#allocation96_spill]] %s2863_s2  ;;  %s3232_s11 = sshll.u32 %s2863_s2, 7 }
 0x248   : > { %3269 = sst [smem:[#allocation97_spill]] %s2865_s9  ;;  %s568_s13 = sshll.u32 %s920_s23, 4  ;;  %s2888_s13 = int_to_ptr.vmem [resolvable:$true] %s568_s13 }
 0x249   : > { %s1076_s19 = sshll.u32 %s2843_s12, 4  ;;  %s555_s26 = sadd.s32 %s3232_s11, %s2865_s9 }
 0x24a   : > { %s535_s21 = scalar_lea.hbm %s3204_s1, %s1076_s19  ;;  %s2875_s14 = sld [smem:[#allocation5 + %s555_s26]] }
 0x24b   : > { %s1823_s27 = scalar_lea.hbm %s535_s21, 16  ;;  %p1826_p3 = scmp.lt.u32.totalorder %s535_s21, %s3204_s1 }
 0x24c   : > { %p1824_p6 = scmp.ne.s32.totalorder %s535_s21, %s1823_s27  ;;  %p1827_p10 = scmp.lt.u32.totalorder %s2397_s4, %s1823_s27 }
 0x24d   : > { %p1829_p7 = scmp.lt.u32.totalorder %s1823_s27, %s535_s21 }
 0x24e   : > { %p1828_p1 = por %p1827_p10, %p1826_p3 }
 0x250   : > { %p1830_p9 = por %p1829_p7, %p1828_p1 }
 0x252   : > { %p1831_p4 = pnand %p1830_p9, %p1824_p6 }
 0x254   : > { %1834 = shalt.err (!%p1831_p4)  }
 0x255   : > { %s1835_s16 = scalar_lea.vmem %s2848_s24, 16  ;;  %p1840_p0 = scmp.lt.s32.totalorder %s2848_s24, %s2383_s30 }
 0x256   : > { %p1836_p13 = scmp.ne.s32.totalorder %s2848_s24, %s1835_s16  ;;  %p1841_p5 = scmp.lt.s32.totalorder %s2408_s15, %s1835_s16 }
 0x258   : > { %p1842_p8 = por %p1841_p5, %p1840_p0 }
 0x25a   : > { %p1843_p2 = pnand %p1842_p8, %p1836_p13 }
 0x25c   : > { %1846 = shalt.err (!%p1843_p2)  }
 0x25d   : > { %547 = dma.hbm_to_vmem [thread:$0]  %s535_s21, 16, %s2848_s24, %s2762_s22 }
 0x25e   : > { %s572_s29 = sadd.s32 6, %s2729_s5  ;;  %s925_s19 = scalar_lea.vmem %s2738_s18, 6 [#allocation2] }
 0x25f   : > { %s2891_s12 = sshra.s32 %s572_s29, 7  ;;  %s2893_s25 = sand.u32 127, %s572_s29 }
 0x260   : > { %3270 = sst [smem:[#allocation98_spill]] %s2891_s12  ;;  %s3234_s23 = sshll.u32 %s2891_s12, 7 }
 0x261   : > { %3271 = sst [smem:[#allocation99_spill]] %s2893_s25  ;;  %s579_s26 = sadd.s32 %s3234_s23, %s2893_s25 }
 0x262   : > { %s592_s20 = sshll.u32 %s925_s19, 4  ;;  %s1079_s27 = sshll.u32 %s2875_s14, 4  ;;  %s2906_s20 = int_to_ptr.vmem [resolvable:$true] %s592_s20 }
 0x263   : > { %s2901_s17 = sld [smem:[#allocation5 + %s579_s26]]  ;;  %s559_s16 = scalar_lea.hbm %s3204_s1, %s1079_s27 }
 0x264   : > { %s1847_s11 = scalar_lea.hbm %s559_s16, 16  ;;  %p1850_p12 = scmp.lt.u32.totalorder %s559_s16, %s3204_s1 }
 0x265   : > { %p1848_p11 = scmp.ne.s32.totalorder %s559_s16, %s1847_s11  ;;  %p1851_p6 = scmp.lt.u32.totalorder %s2397_s4, %s1847_s11 }
 0x266   : > { %p1853_p10 = scmp.lt.u32.totalorder %s1847_s11, %s559_s16 }
 0x267   : > { %p1852_p3 = por %p1851_p6, %p1850_p12 }
 0x269   : > { %p1854_p1 = por %p1853_p10, %p1852_p3 }
 0x26b   : > { %p1855_p7 = pnand %p1854_p1, %p1848_p11 }
 0x26d   : > { %1858 = shalt.err (!%p1855_p7)  }
 0x26e   : > { %s1859_s14 = scalar_lea.vmem %s2888_s13, 16  ;;  %p1864_p4 = scmp.lt.s32.totalorder %s2888_s13, %s2383_s30 }
 0x26f   : > { %p1860_p9 = scmp.ne.s32.totalorder %s2888_s13, %s1859_s14  ;;  %p1865_p13 = scmp.lt.s32.totalorder %s2408_s15, %s1859_s14 }
 0x271   : > { %p1866_p0 = por %p1865_p13, %p1864_p4 }
 0x273   : > { %p1867_p5 = pnand %p1866_p0, %p1860_p9 }
 0x275   : > { %1870 = shalt.err (!%p1867_p5)  }
 0x276   : > { %571 = dma.hbm_to_vmem [thread:$0]  %s559_s16, 16, %s2888_s13, %s2762_s22 }
 0x277   : > { %s596_s9 = sadd.s32 7, %s2729_s5  ;;  %s930_s11 = scalar_lea.vmem %s2738_s18, 7 [#allocation2] }
 0x278   : > { %s2921_s19 = sshra.s32 %s596_s9, 7  ;;  %s2923_s26 = sand.u32 127, %s596_s9 }
 0x279   : > { %3272 = sst [smem:[#allocation100_spill]] %s2921_s19  ;;  %s3238_s27 = sshll.u32 %s2921_s19, 7 }
 0x27a   : > { %3273 = sst [smem:[#allocation101_spill]] %s2923_s26  ;;  %s616_s21 = sshll.u32 %s930_s11, 4  ;;  %s2946_s21 = int_to_ptr.vmem [resolvable:$true] %s616_s21 }
 0x27b   : > { %s1082_s24 = sshll.u32 %s2901_s17, 4  ;;  %s603_s29 = sadd.s32 %s3238_s27, %s2923_s26 }
 0x27c   : > { %s583_s25 = scalar_lea.hbm %s3204_s1, %s1082_s24  ;;  %s2933_s12 = sld [smem:[#allocation5 + %s603_s29]] }
 0x27d   : > { %s1871_s13 = scalar_lea.hbm %s583_s25, 16  ;;  %p1874_p2 = scmp.lt.u32.totalorder %s583_s25, %s3204_s1 }
 0x27e   : > { %p1872_p8 = scmp.ne.s32.totalorder %s583_s25, %s1871_s13  ;;  %p1875_p11 = scmp.lt.u32.totalorder %s2397_s4, %s1871_s13 }
 0x27f   : > { %p1877_p6 = scmp.lt.u32.totalorder %s1871_s13, %s583_s25 }
 0x280   : > { %p1876_p12 = por %p1875_p11, %p1874_p2 }
 0x282   : > { %p1878_p3 = por %p1877_p6, %p1876_p12 }
 0x284   : > { %p1879_p10 = pnand %p1878_p3, %p1872_p8 }
 0x286   : > { %1882 = shalt.err (!%p1879_p10)  }
 0x287   : > { %s1883_s23 = scalar_lea.vmem %s2906_s20, 16  ;;  %p1888_p7 = scmp.lt.s32.totalorder %s2906_s20, %s2383_s30 }
 0x288   : > { %p1884_p1 = scmp.ne.s32.totalorder %s2906_s20, %s1883_s23  ;;  %p1889_p9 = scmp.lt.s32.totalorder %s2408_s15, %s1883_s23 }
 0x28a   : > { %p1890_p4 = por %p1889_p9, %p1888_p7 }
 0x28c   : > { %p1891_p13 = pnand %p1890_p4, %p1884_p1 }
 0x28e   : > { %1894 = shalt.err (!%p1891_p13)  }
 0x28f   : > { %595 = dma.hbm_to_vmem [thread:$0]  %s583_s25, 16, %s2906_s20, %s2762_s22 }
 0x290   : > { %s3274_s2 = sand.u32 127, %s2729_s5  ;;  %s3275_s17 = sadd.s32 128, %s2733_s28 }
 0x291   : > { %s623_s9 = sadd.s32 %s3275_s17, %s3274_s2  ;;  %s935_s24 = scalar_lea.vmem %s2738_s18, 8 [#allocation2] }
 0x292   : > { %s2952_s11 = sld [smem:[#allocation5 + %s623_s9]]  ;;  %s636_s29 = sshll.u32 %s935_s24, 4  ;;  %s2957_s29 = int_to_ptr.vmem [resolvable:$true] %s636_s29 }
 0x293   : > { %s3276_s14 = sshll.u32 %s2746_s10, 7  ;;  %s1085_s23 = sshll.u32 %s2933_s12, 4 }
 0x294   : > { %s1126_s13 = sadd.s32 128, %s3276_s14  ;;  %s607_s20 = scalar_lea.hbm %s3204_s1, %s1085_s23 }
 0x295   : > { %s642_s16 = sadd.s32 %s1126_s13, %s2748_s0  ;;  %s940_s19 = scalar_lea.vmem %s2738_s18, 9 [#allocation2] }
 0x296   : > { %s2961_s27 = sld [smem:[#allocation5 + %s642_s16]]  ;;  %s1895_s5 = scalar_lea.hbm %s607_s20, 16 }
 0x297   : > { %p1896_p0 = scmp.ne.s32.totalorder %s607_s20, %s1895_s5  ;;  %p1898_p5 = scmp.lt.u32.totalorder %s607_s20, %s3204_s1 }
 0x298   : > { %p1899_p8 = scmp.lt.u32.totalorder %s2397_s4, %s1895_s5  ;;  %p1901_p11 = scmp.lt.u32.totalorder %s1895_s5, %s607_s20 }
 0x29a   : > { %p1900_p2 = por %p1899_p8, %p1898_p5 }
 0x29c   : > { %p1902_p12 = por %p1901_p11, %p1900_p2 }
 0x29e   : > { %p1903_p6 = pnand %p1902_p12, %p1896_p0 }
 0x2a0   : > { %1906 = shalt.err (!%p1903_p6)  }
 0x2a1   : > { %s1907_s10 = scalar_lea.vmem %s2946_s21, 16  ;;  %p1912_p10 = scmp.lt.s32.totalorder %s2946_s21, %s2383_s30 }
 0x2a2   : > { %p1908_p3 = scmp.ne.s32.totalorder %s2946_s21, %s1907_s10  ;;  %p1913_p1 = scmp.lt.s32.totalorder %s2408_s15, %s1907_s10 }
 0x2a4   : > { %p1914_p7 = por %p1913_p1, %p1912_p10 }
 0x2a6   : > { %p1915_p9 = pnand %p1914_p7, %p1908_p3 }
 0x2a8   : > { %1918 = shalt.err (!%p1915_p9)  }
 0x2a9   : > { %619 = dma.hbm_to_vmem [thread:$0]  %s607_s20, 16, %s2946_s21, %s2762_s22 }
 0x2aa   : > { %s1088_s0 = sshll.u32 %s2952_s11, 4  ;;  %s655_s12 = sshll.u32 %s940_s19, 4  ;;  %s2982_s12 = int_to_ptr.vmem [resolvable:$true] %s655_s12 }
 0x2ab   : > { %s627_s9 = scalar_lea.hbm %s3204_s1, %s1088_s0 }
 0x2ac   : > { %s1919_s24 = scalar_lea.hbm %s627_s9, 16  ;;  %p1922_p13 = scmp.lt.u32.totalorder %s627_s9, %s3204_s1 }
 0x2ad   : > { %p1920_p4 = scmp.ne.s32.totalorder %s627_s9, %s1919_s24  ;;  %p1923_p0 = scmp.lt.u32.totalorder %s2397_s4, %s1919_s24 }
 0x2ae   : > { %p1925_p8 = scmp.lt.u32.totalorder %s1919_s24, %s627_s9 }
 0x2af   : > { %p1924_p5 = por %p1923_p0, %p1922_p13 }
 0x2b1   : > { %p1926_p2 = por %p1925_p8, %p1924_p5 }
 0x2b3   : > { %p1927_p11 = pnand %p1926_p2, %p1920_p4 }
 0x2b5   : > { %1930 = shalt.err (!%p1927_p11)  }
 0x2b6   : > { %s1931_s19 = scalar_lea.vmem %s2957_s29, 16  ;;  %p1936_p6 = scmp.lt.s32.totalorder %s2957_s29, %s2383_s30 }
 0x2b7   : > { %p1932_p12 = scmp.ne.s32.totalorder %s2957_s29, %s1931_s19  ;;  %p1937_p3 = scmp.lt.s32.totalorder %s2408_s15, %s1931_s19 }
 0x2b9   : > { %p1938_p10 = por %p1937_p3, %p1936_p6 }
 0x2bb   : > { %p1939_p1 = pnand %p1938_p10, %p1932_p12 }
 0x2bd   : > { %1942 = shalt.err (!%p1939_p1)  }
 0x2be   : > { %639 = dma.hbm_to_vmem [thread:$0]  %s627_s9, 16, %s2957_s29, %s2762_s22 }
 0x2bf   : > { %s1091_s21 = sshll.u32 %s2961_s27, 4  ;;  %s3277_s11 = sshll.u32 %s2775_s3, 7 }
 0x2c0   : > { %s1128_s16 = sadd.s32 128, %s3277_s11  ;;  %s646_s20 = scalar_lea.hbm %s3204_s1, %s1091_s21 }
 0x2c1   : > { %s661_s5 = sadd.s32 %s1128_s16, %s2777_s7  ;;  %s1943_s28 = scalar_lea.hbm %s646_s20, 16 }
 0x2c2   : > { %p1944_p7 = scmp.ne.s32.totalorder %s646_s20, %s1943_s28  ;;  %p1946_p9 = scmp.lt.u32.totalorder %s646_s20, %s3204_s1 }
 0x2c3   : > { %p1947_p4 = scmp.lt.u32.totalorder %s2397_s4, %s1943_s28  ;;  %p1949_p0 = scmp.lt.u32.totalorder %s1943_s28, %s646_s20 }
 0x2c5   : > { %p1948_p13 = por %p1947_p4, %p1946_p9 }
 0x2c7   : > { %p1950_p5 = por %p1949_p0, %p1948_p13 }
 0x2c9   : > { %p1951_p8 = pnand %p1950_p5, %p1944_p7 }
 0x2cb   : > { %1954 = shalt.err (!%p1951_p8)  }
 0x2cc   : > { %s1955_s3 = scalar_lea.vmem %s2982_s12, 16  ;;  %p1960_p11 = scmp.lt.s32.totalorder %s2982_s12, %s2383_s30 }
 0x2cd   : > { %p1956_p2 = scmp.ne.s32.totalorder %s2982_s12, %s1955_s3  ;;  %p1961_p12 = scmp.lt.s32.totalorder %s2408_s15, %s1955_s3 }
 0x2cf   : > { %p1962_p6 = por %p1961_p12, %p1960_p11 }
 0x2d1   : > { %p1963_p3 = pnand %p1962_p6, %p1956_p2 }
 0x2d3   : > { %1966 = shalt.err (!%p1963_p3)  }
 0x2d4   : > { %s3278_s7 = sld [smem:[#allocation94_spill]]  ;;  %s3279_s27 = sld [smem:[#allocation95_spill]] }
 0x2d5   : > { %658 = dma.hbm_to_vmem [thread:$0]  %s646_s20, 16, %s2982_s12, %s2762_s22 }
 0x2d6   : > { %s662_s29 = sld [smem:[#allocation5 + %s661_s5]]  ;;  %s945_s0 = scalar_lea.vmem %s2738_s18, 10 [#allocation2] }
 0x2d7   : > { %s674_s26 = sshll.u32 %s945_s0, 4  ;;  %s3280_s17 = sshll.u32 %s2805_s6, 7  ;;  %s3016_s26 = int_to_ptr.vmem [resolvable:$true] %s674_s26 }
 0x2d8   : > { %s1130_s9 = sadd.s32 128, %s3280_s17  ;;  %s950_s13 = scalar_lea.vmem %s2738_s18, 11 [#allocation2] }
 0x2d9   : > { %s680_s24 = sadd.s32 %s1130_s9, %s2807_s8  ;;  %s693_s19 = sshll.u32 %s950_s13, 4  ;;  %s3024_s19 = int_to_ptr.vmem [resolvable:$true] %s693_s19 }
 0x2da   : > { %s3019_s14 = sld [smem:[#allocation5 + %s680_s24]]  ;;  %s3281_s21 = sshll.u32 %s3278_s7, 7 }
 0x2db   : > { %s1132_s11 = sadd.s32 128, %s3281_s21  ;;  %s955_s5 = scalar_lea.vmem %s2738_s18, 12 [#allocation2] }
 0x2dc   : > { %s699_s16 = sadd.s32 %s1132_s11, %s3279_s27  ;;  %s1094_s12 = sshll.u32 %s662_s29, 4 }
 0x2dd   : > { %s3027_s23 = sld [smem:[#allocation5 + %s699_s16]]  ;;  %s665_s6 = scalar_lea.hbm %s3204_s1, %s1094_s12 }
 0x2de   : > { %s1967_s28 = scalar_lea.hbm %s665_s6, 16  ;;  %p1970_p1 = scmp.lt.u32.totalorder %s665_s6, %s3204_s1 }
 0x2df   : > { %p1968_p10 = scmp.ne.s32.totalorder %s665_s6, %s1967_s28  ;;  %p1971_p7 = scmp.lt.u32.totalorder %s2397_s4, %s1967_s28 }
 0x2e0   : > { %p1973_p4 = scmp.lt.u32.totalorder %s1967_s28, %s665_s6 }
 0x2e1   : > { %p1972_p9 = por %p1971_p7, %p1970_p1 }
 0x2e3   : > { %p1974_p13 = por %p1973_p4, %p1972_p9 }
 0x2e5   : > { %p1975_p0 = pnand %p1974_p13, %p1968_p10 }
 0x2e7   : > { %1978 = shalt.err (!%p1975_p0)  }
 0x2e8   : > { %s1979_s10 = scalar_lea.vmem %s3016_s26, 16  ;;  %p1984_p8 = scmp.lt.s32.totalorder %s3016_s26, %s2383_s30 }
 0x2e9   : > { %p1980_p5 = scmp.ne.s32.totalorder %s3016_s26, %s1979_s10  ;;  %p1985_p2 = scmp.lt.s32.totalorder %s2408_s15, %s1979_s10 }
 0x2eb   : > { %p1986_p11 = por %p1985_p2, %p1984_p8 }
 0x2ed   : > { %p1987_p12 = pnand %p1986_p11, %p1980_p5 }
 0x2ef   : > { %1990 = shalt.err (!%p1987_p12)  }
 0x2f0   : > { %677 = dma.hbm_to_vmem [thread:$0]  %s665_s6, 16, %s3016_s26, %s2762_s22 }
 0x2f1   : > { %s1097_s3 = sshll.u32 %s3019_s14, 4  ;;  %s712_s7 = sshll.u32 %s955_s5, 4  ;;  %s3048_s7 = int_to_ptr.vmem [resolvable:$true] %s712_s7 }
 0x2f2   : > { %s684_s0 = scalar_lea.hbm %s3204_s1, %s1097_s3 }
 0x2f3   : > { %s1991_s17 = scalar_lea.hbm %s684_s0, 16  ;;  %p1994_p3 = scmp.lt.u32.totalorder %s684_s0, %s3204_s1 }
 0x2f4   : > { %p1992_p6 = scmp.ne.s32.totalorder %s684_s0, %s1991_s17  ;;  %p1995_p10 = scmp.lt.u32.totalorder %s2397_s4, %s1991_s17 }
 0x2f5   : > { %p1997_p7 = scmp.lt.u32.totalorder %s1991_s17, %s684_s0 }
 0x2f6   : > { %p1996_p1 = por %p1995_p10, %p1994_p3 }
 0x2f8   : > { %p1998_p9 = por %p1997_p7, %p1996_p1 }
 0x2fa   : > { %p1999_p4 = pnand %p1998_p9, %p1992_p6 }
 0x2fc   : > { %2002 = shalt.err (!%p1999_p4)  }
 0x2fd   : > { %s2003_s26 = scalar_lea.vmem %s3024_s19, 16  ;;  %p2008_p0 = scmp.lt.s32.totalorder %s3024_s19, %s2383_s30 }
 0x2fe   : > { %p2004_p13 = scmp.ne.s32.totalorder %s3024_s19, %s2003_s26  ;;  %p2009_p5 = scmp.lt.s32.totalorder %s2408_s15, %s2003_s26 }
 0x300   : > { %p2010_p8 = por %p2009_p5, %p2008_p0 }
 0x302   : > { %p2011_p2 = pnand %p2010_p8, %p2004_p13 }
 0x304   : > { %2014 = shalt.err (!%p2011_p2)  }
 0x305   : > { %s3282_s14 = sld [smem:[#allocation96_spill]]  ;;  %s3283_s13 = sld [smem:[#allocation97_spill]] }
 0x306   : > { %696 = dma.hbm_to_vmem [thread:$0]  %s684_s0, 16, %s3024_s19, %s2762_s22 }
 0x307   : > { %s1100_s21 = sshll.u32 %s3027_s23, 4 }
 0x308   : > { %s703_s20 = scalar_lea.hbm %s3204_s1, %s1100_s21 }
 0x309   : > { %s2015_s5 = scalar_lea.hbm %s703_s20, 16  ;;  %p2018_p12 = scmp.lt.u32.totalorder %s703_s20, %s3204_s1 }
 0x30a   : > { %p2016_p11 = scmp.ne.s32.totalorder %s703_s20, %s2015_s5  ;;  %p2019_p6 = scmp.lt.u32.totalorder %s2397_s4, %s2015_s5 }
 0x30b   : > { %s3284_s11 = sshll.u32 %s3282_s14, 7  ;;  %p2021_p10 = scmp.lt.u32.totalorder %s2015_s5, %s703_s20 }
 0x30c   : > { %s1134_s16 = sadd.s32 128, %s3284_s11  ;;  %p2020_p3 = por %p2019_p6, %p2018_p12 }
 0x30d   : > { %s718_s6 = sadd.s32 %s1134_s16, %s3283_s13 }
 0x30e   : > { %p2022_p1 = por %p2021_p10, %p2020_p3 }
 0x310   : > { %p2023_p7 = pnand %p2022_p1, %p2016_p11 }
 0x312   : > { %2026 = shalt.err (!%p2023_p7)  }
 0x313   : > { %s2027_s19 = scalar_lea.vmem %s3048_s7, 16  ;;  %p2032_p4 = scmp.lt.s32.totalorder %s3048_s7, %s2383_s30 }
 0x314   : > { %p2028_p9 = scmp.ne.s32.totalorder %s3048_s7, %s2027_s19  ;;  %p2033_p13 = scmp.lt.s32.totalorder %s2408_s15, %s2027_s19 }
 0x316   : > { %p2034_p0 = por %p2033_p13, %p2032_p4 }
 0x318   : > { %p2035_p5 = pnand %p2034_p0, %p2028_p9 }
 0x31a   : > { %2038 = shalt.err (!%p2035_p5)  }
 0x31b   : > { %s3285_s23 = sld [smem:[#allocation98_spill]]  ;;  %s3286_s2 = sld [smem:[#allocation99_spill]] }
 0x31c   : > { %s3287_s10 = sld [smem:[#allocation100_spill]]  ;;  %s3288_s3 = sld [smem:[#allocation101_spill]] }
 0x31d   : > { %715 = dma.hbm_to_vmem [thread:$0]  %s703_s20, 16, %s3048_s7, %s2762_s22 }
 0x31e   : > { %s719_s27 = sld [smem:[#allocation5 + %s718_s6]]  ;;  %s960_s29 = scalar_lea.vmem %s2738_s18, 13 [#allocation2] }
 0x31f   : > { %s731_s0 = sshll.u32 %s960_s29, 4  ;;  %s965_s14 = scalar_lea.vmem %s2738_s18, 14 [#allocation2]  ;;  %s3082_s0 = int_to_ptr.vmem [resolvable:$true] %s731_s0 }
 0x320   : > { %s750_s13 = sshll.u32 %s965_s14, 4  ;;  %s970_s5 = scalar_lea.vmem %s2738_s18, 15 [#allocation2]  ;;  %s3090_s13 = int_to_ptr.vmem [resolvable:$true] %s750_s13 }
 0x321   : > { %s3289_s17 = sshll.u32 %s3285_s23, 7 }
 0x322   : > { %s1136_s9 = sadd.s32 128, %s3289_s17  ;;  %s3290_s21 = sshll.u32 %s3287_s10, 7 }
 0x323   : > { %s737_s24 = sadd.s32 %s1136_s9, %s3286_s2  ;;  %s1138_s11 = sadd.s32 128, %s3290_s21 }
 0x324   : > { %s3085_s26 = sld [smem:[#allocation5 + %s737_s24]]  ;;  %s756_s16 = sadd.s32 %s1138_s11, %s3288_s3 }
 0x325   : > { %s1103_s7 = sshll.u32 %s719_s27, 4  ;;  %s3093_s12 = sld [smem:[#allocation5 + %s756_s16]] }
 0x326   : > { %s722_s6 = scalar_lea.hbm %s3204_s1, %s1103_s7 }
 0x327   : > { %s2039_s28 = scalar_lea.hbm %s722_s6, 16  ;;  %p2042_p2 = scmp.lt.u32.totalorder %s722_s6, %s3204_s1 }
 0x328   : > { %p2040_p8 = scmp.ne.s32.totalorder %s722_s6, %s2039_s28  ;;  %p2043_p11 = scmp.lt.u32.totalorder %s2397_s4, %s2039_s28 }
 0x329   : > { %p2045_p6 = scmp.lt.u32.totalorder %s2039_s28, %s722_s6 }
 0x32a   : > { %p2044_p12 = por %p2043_p11, %p2042_p2 }
 0x32c   : > { %p2046_p3 = por %p2045_p6, %p2044_p12 }
 0x32e   : > { %p2047_p10 = pnand %p2046_p3, %p2040_p8 }
 0x330   : > { %2050 = shalt.err (!%p2047_p10)  }
 0x331   : > { %s2051_s23 = scalar_lea.vmem %s3082_s0, 16  ;;  %p2056_p7 = scmp.lt.s32.totalorder %s3082_s0, %s2383_s30 }
 0x332   : > { %p2052_p1 = scmp.ne.s32.totalorder %s3082_s0, %s2051_s23  ;;  %p2057_p9 = scmp.lt.s32.totalorder %s2408_s15, %s2051_s23 }
 0x334   : > { %p2058_p4 = por %p2057_p9, %p2056_p7 }
 0x336   : > { %p2059_p13 = pnand %p2058_p4, %p2052_p1 }
 0x338   : > { %2062 = shalt.err (!%p2059_p13)  }
 0x339   : > { %734 = dma.hbm_to_vmem [thread:$0]  %s722_s6, 16, %s3082_s0, %s2762_s22 }
 0x33a   : > { %s1106_s18 = sshll.u32 %s3085_s26, 4  ;;  %s769_s2 = sshll.u32 %s970_s5, 4  ;;  %s3114_s2 = int_to_ptr.vmem [resolvable:$true] %s769_s2 }
 0x33b   : > { %s741_s27 = scalar_lea.hbm %s3204_s1, %s1106_s18 }
 0x33c   : > { %s2063_s29 = scalar_lea.hbm %s741_s27, 16  ;;  %p2066_p5 = scmp.lt.u32.totalorder %s741_s27, %s3204_s1 }
 0x33d   : > { %p2064_p0 = scmp.ne.s32.totalorder %s741_s27, %s2063_s29  ;;  %p2067_p8 = scmp.lt.u32.totalorder %s2397_s4, %s2063_s29 }
 0x33e   : > { %p2069_p11 = scmp.lt.u32.totalorder %s2063_s29, %s741_s27 }
 0x33f   : > { %p2068_p2 = por %p2067_p8, %p2066_p5 }
 0x341   : > { %p2070_p12 = por %p2069_p11, %p2068_p2 }
 0x343   : > { %p2071_p6 = pnand %p2070_p12, %p2064_p0 }
 0x345   : > { %2074 = shalt.err (!%p2071_p6)  }
 0x346   : > { %s2075_s0 = scalar_lea.vmem %s3090_s13, 16  ;;  %p2080_p10 = scmp.lt.s32.totalorder %s3090_s13, %s2383_s30 }
 0x347   : > { %p2076_p3 = scmp.ne.s32.totalorder %s3090_s13, %s2075_s0  ;;  %p2081_p1 = scmp.lt.s32.totalorder %s2408_s15, %s2075_s0 }
 0x349   : > { %p2082_p7 = por %p2081_p1, %p2080_p10 }
 0x34b   : > { %p2083_p9 = pnand %p2082_p7, %p2076_p3 }
 0x34d   : > { %2086 = shalt.err (!%p2083_p9)  }
 0x34e   : > { %753 = dma.hbm_to_vmem [thread:$0]  %s741_s27, 16, %s3090_s13, %s2762_s22 }
 0x34f   : > { %s1109_s24 = sshll.u32 %s3093_s12, 4 }
 0x350   : > { %s760_s21 = scalar_lea.hbm %s3204_s1, %s1109_s24 }
 0x351   : > { %s2087_s11 = scalar_lea.hbm %s760_s21, 16  ;;  %p2090_p13 = scmp.lt.u32.totalorder %s760_s21, %s3204_s1 }
 0x352   : > { %p2088_p4 = scmp.ne.s32.totalorder %s760_s21, %s2087_s11  ;;  %p2091_p0 = scmp.lt.u32.totalorder %s2397_s4, %s2087_s11 }
 0x353   : > { %p2093_p8 = scmp.lt.u32.totalorder %s2087_s11, %s760_s21 }
 0x354   : > { %p2092_p5 = por %p2091_p0, %p2090_p13 }
 0x356   : > { %p2094_p2 = por %p2093_p8, %p2092_p5 }
 0x358   : > { %p2095_p11 = pnand %p2094_p2, %p2088_p4 }
 0x35a   : > { %2098 = shalt.err (!%p2095_p11)  }
 0x35b   : > { %s2099_s13 = scalar_lea.vmem %s3114_s2, 16  ;;  %p2104_p6 = scmp.lt.s32.totalorder %s3114_s2, %s2383_s30 }
 0x35c   : > { %p2100_p12 = scmp.ne.s32.totalorder %s3114_s2, %s2099_s13  ;;  %p2105_p3 = scmp.lt.s32.totalorder %s2408_s15, %s2099_s13 }
 0x35e   : > { %p2106_p10 = por %p2105_p3, %p2104_p6 }
 0x360   : > { %p2107_p1 = pnand %p2106_p10, %p2100_p12 }
 0x362   : > { %2110 = shalt.err (!%p2107_p1)  }
 0x363   : > { %772 = dma.hbm_to_vmem [thread:$0]  %s760_s21, 16, %s3114_s2, %s2762_s22 }
 0x364 PF: > { %s3291_s4 = sld [smem:[#allocation92_spill]] }
 0x36a   : > { %s1111_s12 = sshll.u32 %s3291_s4, 4  ;;  %s774_s25 = scalar_lea.sflag [#allocation3], %s3291_s4 }
 0x36b   : > { %2169 = dma.done.wait %s774_s25, 256 }
 0x36c   : > { %2170 = vsyncadd %s774_s25, 4294967040  ;;  %s3292_s20 = sld [smem:[#allocation83_spill]]  ;;  %s3293_s6 = sld [smem:[#allocation93_spill]] }
 0x36d   : > { %s3294_s5 = sld [smem:[#allocation91_spill]]  ;;  %s3295_s30 = sld [smem:[#allocation90_spill]] }
 0x36e   : > { %s3296_s15 = sld [smem:[#allocation87_spill]]  ;;  %s3297_s18 = sld [smem:[#allocation103_spill]] }
 0x36f   : > { %s779_s2 = scalar_lea.vmem [#allocation2], %s1111_s12  ;;  %s2217_s27 = smov [#allocation9]  }
 0x370   : > { %v780_v1 = vld [vmem:[%s779_s2] sm:$0xff]  ;;  %v1113_v2 = vld [vmem:[%s779_s2 + $0x8] sm:$0xff]  ;;  %s2115_s29 = sshll.u32 %s2217_s27, 4  ;;  %s2116_s29 = int_to_ptr.vmem [resolvable:$false] %s2115_s29 }
 0x371   : > { %s2117_s17 = scalar_lea.vmem %s2116_s29, 512 }
 0x372   : > { %s1116_s28 = sshll.u32 %s3292_s20, 7  ;;  %s805_s8 = sshll.u32 %s3293_s6, 4  ;;  %s3152_s8 = int_to_ptr.vmem [resolvable:$true] %s805_s8 }
 0x373   : > { %v778_v0 = vld [vmem:[%s3294_s5] sm:$0xff]  ;;  %s790_s10 = scalar_lea.sflag [#allocation8], %s3295_s30  ;;  %s2111_s3 = scalar_lea.vmem %s3152_s8, 256 }
 0x374   : > { %s3149_s22 = scalar_lea.hbm %s3297_s18, %s1116_s28  ;;  %v781_v3 = vadd.f32 %v780_v1, %v778_v0  ;;  %v786_v4 = vadd.f32 %v1113_v2, %v778_v0  ;;  %p2112_p7 = scmp.ne.s32.totalorder %s3152_s8, %s2111_s3 }
 0x375   : > { %p3298_p9 = scmp.ne.s32.totalorder %s3296_s15, 0  ;;  %p2118_p0 = scmp.lt.s32.totalorder %s3152_s8, %s2116_s29 }
 0x376   : > { %782 = vst [vmem:[%s3293_s6] sm:$0xff] %v781_v3  ;;  %1114 = vst [vmem:[%s3293_s6 + $0x8] sm:$0xff] %v786_v4  ;;  %p2119_p5 = scmp.lt.s32.totalorder %s2117_s17, %s2111_s3 }
 0x377   : > { %p2113_p4 = pnand %p2112_p7, %p3298_p9 }
 0x378   : > { %p2120_p8 = por %p2119_p5, %p2118_p0 }
 0x379   : > { %p2114_p13 = pneg %p2113_p4 }
 0x37b   : > { %p2121_p2 = pnand %p2120_p8, %p2114_p13 }
 0x37d   : > { %2124 = shalt.err (!%p2121_p2)
}
 0x37e   : > { %s2125_s9 = scalar_lea.hbm %s3149_s22, 256  ;;  %s2129_s26 = scalar_lea.hbm %s3297_s18, 512 }
 0x37f   : > { %p2126_p11 = scmp.ne.s32.totalorder %s3149_s22, %s2125_s9  ;;  %p2130_p3 = scmp.lt.u32.totalorder %s3149_s22, %s3297_s18 }
 0x380   : > { %p2131_p10 = scmp.lt.u32.totalorder %s2129_s26, %s2125_s9  ;;  %p2133_p7 = scmp.lt.u32.totalorder %s2125_s9, %s3149_s22 }
 0x381   : > { %p2127_p12 = pnand %p2126_p11, %p3298_p9 }
 0x382   : > { %p2132_p1 = por %p2131_p10, %p2130_p3 }
 0x383   : > { %p2128_p6 = pneg %p2127_p12 }
 0x384   : > { %p2134_p4 = por %p2133_p7, %p2132_p1 }
 0x386   : > { %p2135_p13 = pnand %p2134_p4, %p2128_p6 }
 0x388   : > { %2138 = shalt.err (!%p2135_p13)
}
 0x389   : > { %s2218_s11 = smov 128   ;;  %s2219_s16 = smov 256  }
 0x38a   : > { %s2220_s7 = smov 8  }
 0x38b   : > { %1158 = dma.vmem_to_hbm [thread:$0]  (%p3298_p9), %s3152_s8, 256, %s3149_s22, %s790_s10, %s2218_s11, %s2219_s16, %s2220_s7  }
 0x38c PF: > { %s3299_s13 = sld [smem:[#allocation80_spill]]  ;;  %s3300_s4 = sld [smem:[#allocation89_spill]] }
 0x38d   : > { %s3301_s12 = sld [smem:[#allocation85_spill]] }
 0x392   : > { %s820_s25 = sand.u32 1, %s3299_s13   ;;  %p3302_p0 = scmp.ne.s32.totalorder %s3300_s4, 0 }
 0x393   : > { %p3303_p5 = scmp.ge.s32.totalorder %s3301_s12, 2  ;;  %s821_s20 = scalar_lea.sflag [#allocation8], %s820_s25 }
 0x395   : > { %p1165_p8 = pnand %p3303_p5, %p3302_p0 }
 0x397   : > { %2172 = dma.done.wait (!%p1165_p8), %s821_s20, 256  }
 0x398   : > { %2174 = vsyncadd (!%p1165_p8), %s821_s20, 4294967040  ;;  %s23_s27 = sadd.s32 1, %s3301_s12   ;;  %s3304_s22 = sld [smem:[#allocation81_spill]] }
 0x399   : > { %p20_p2 = scmp.ge.s32.totalorder %s23_s27, 4   ;;  %s3305_s23 = sld [smem:[#allocation82_spill]] }
 0x39a   : > { %s3306_s24 = sld [smem:[#allocation88_spill]]  ;;  %s3307_s25 = sld [smem:[#allocation84_spill]] }
 0x39b   : > { %s3308_s26 = sld [smem:[#allocation86_spill]]  ;;  %22 = sbr.rel (!%p20_p2) target bundleno = 19 (0x13), region = 274 }
 0x3a2   :  { %826 = vsyncpa [#allocation7], 1 }
 0x3a3   :  { %828 = vsyncpa [#allocation7 + $0x1], 1 }
 0x3a4   :  { %829 = vsyncpa [#allocation8], 1 }
 0x3a5   :  { %831 = vsyncpa [#allocation8 + $0x1], 1 }
 0x3a6   :  { %832 = vsyncmov [#allocation3] }
 0x3a9   :  { %s833_s6 = vpop.sfrf %832 }
 0x3aa   :  { %p1119_p9 = scmp.ne.s32.totalorder %s833_s6, 0 }
 0x3ac   :  { %837 = shalt.err (%p1119_p9)  }
 0x3ad   :  { %839 = vsyncmov [#allocation3 + $0x1] }
 0x3b0   :  { %s840_s5 = vpop.sfrf %839 }
 0x3b1   :  { %p1120_p11 = scmp.ne.s32.totalorder %s840_s5, 0 }
 0x3b3   :  { %844 = shalt.err (%p1120_p11)  }

</bundles_post_ra>
